<compile_context>
chip_gen: v7x
topology: tpu7x:2x2x1
jax: 0.10.0
libtpu: 0.0.40
codegen_flags: <defaults>
</compile_context>

<pallas_src>
import functools

import jax
import jax.numpy as jnp
from jax.experimental import pallas as pl
from jax.experimental.pallas import tpu as pltpu


def _critic_kernel(x_ref, action_ref, len_ref,
                   w_ih_ref, w_hh_ref, b_gi_ref, b_hn_ref,
                   w_fch_ref, w_fca_ref, b_fc_ref,
                   w_q_ref, b_q_ref,
                   q_ref,
                   gi_ref,
                   *, seq_len, batch_pad, hidden_pad):
    T, Bp, Hp = seq_len, batch_pad, hidden_pad

    # ---- hoisted input projection: one batched matmul over all (t, b) rows ----
    # x_ref is (T*Bp, D), time-major; b_ih + (r,z parts of b_hh) are folded in.
    gi_ref[...] = (
        jnp.dot(x_ref[...], w_ih_ref[...], preferred_element_type=jnp.float32)
        + b_gi_ref[...])

    w_hh = w_hh_ref[...]                                  # (Hp, 3*Hp)
    b_hn = jnp.broadcast_to(b_hn_ref[...], (Bp, Hp))      # broadcast hoisted
    lengths = len_ref[...]                                # (Bp, 1) int32

    h = jnp.zeros((Bp, Hp), jnp.float32)
    last = jnp.zeros((Bp, Hp), jnp.float32)

    # ---- fully-unrolled GRU recurrence (static T, compile-time indices) ----
    for t in range(T):
        gi = gi_ref[pl.ds(t * Bp, Bp), :]                 # (Bp, 3*Hp) aligned load
        gh = jnp.dot(h, w_hh, preferred_element_type=jnp.float32)

        # each gate lives in its own 128-lane slab -> whole-vreg slices
        i_r, i_z, i_n = gi[:, 0:Hp], gi[:, Hp:2 * Hp], gi[:, 2 * Hp:3 * Hp]
        h_r, h_z, h_n = gh[:, 0:Hp], gh[:, Hp:2 * Hp], gh[:, 2 * Hp:3 * Hp]

        r = jax.nn.sigmoid(i_r + h_r)
        z = jax.nn.sigmoid(i_z + h_z)
        n = jnp.tanh(i_n + r * (h_n + b_hn))   # b_hn must stay inside r*(...)
        h = n + z * (h - n)                    # == (1 - z) * n + z * h

        # capture gru_out[b, lengths[b]]  (h at step t when t == lengths[b])
        last = jnp.where(lengths == t, h, last)

    # ---- fc(cat([last_hidden, action])) as a split matmul + ReLU (lane-dense H1p) ----
    pre = (jnp.dot(last, w_fch_ref[...], preferred_element_type=jnp.float32)
           + jnp.dot(action_ref[...], w_fca_ref[...], preferred_element_type=jnp.float32)
           + b_fc_ref[...])
    hidden = jnp.maximum(pre, 0.0)

    # TODO(synk): nn.Dropout is identity at inference; training-mode dropout not implemented.

    # ---- Q head: N=1 matmul replaced by VPU multiply + XLU lane reduce ----
    q = jnp.sum(hidden * w_q_ref[...], axis=-1, keepdims=True) + b_q_ref[...]
    q_ref[...] = q


def _round_up(x, m):
    return ((x + m - 1) // m) * m


def init_critic_params(key, input_dim, action_dim, hidden_dims):
    """Deterministic param init matching the PyTorch module's shapes."""
    H0, H1 = hidden_dims
    ks = jax.random.split(key, 8)

    def u(k, shape, bound):
        return jax.random.uniform(k, shape, jnp.float32, -bound, bound)

    b_gru = 1.0 / jnp.sqrt(jnp.float32(H0))
    b_fc = 1.0 / jnp.sqrt(jnp.float32(H0 + action_dim))
    b_q = 1.0 / jnp.sqrt(jnp.float32(H1))

    return {
        "w_ih": u(ks[0], (3 * H0, input_dim), b_gru),   # GRU weight_ih_l0
        "w_hh": u(ks[1], (3 * H0, H0), b_gru),          # GRU weight_hh_l0
        "b_ih": u(ks[2], (3 * H0,), b_gru),
        "b_hh": u(ks[3], (3 * H0,), b_gru),
        "w_fc": u(ks[4], (H1, H0 + action_dim), b_fc),  # nn.Linear(H0+A, H1)
        "b_fc": u(ks[5], (H1,), b_fc),
        "w_q": u(ks[6], (1, H1), b_q),                  # nn.Linear(H1, 1)
        "b_q": u(ks[7], (1,), b_q),
    }


def critic_forward(state, action, mask, params, hidden_dims):
    B, T, D = state.shape
    A = action.shape[1]
    H0, H1 = hidden_dims
    Hp = _round_up(H0, 128)        # 128-lane slab per gate / padded GRU hidden width
    H1p = _round_up(H1, 128)       # padded FC hidden width (lane-dense ReLU / Q head)
    Bp = _round_up(max(B, 1), 8)   # pad batch to full sublanes

    f32 = jnp.float32
    state = state.astype(f32)
    action = action.astype(f32)
    mask = mask.astype(f32)

    # ---- lengths computed in the wrapper (int32); negatives wrap like PyTorch ----
    lengths = jnp.sum(mask, axis=1).astype(jnp.int32) - 1
    lengths = jnp.where(lengths < 0, lengths + T, lengths)
    lengths_p = jnp.pad(lengths, (0, Bp - B)).reshape(Bp, 1)

    # ---- pad batch to 8 sublanes; flatten state time-major for one projection ----
    state_p = jnp.pad(state, ((0, Bp - B), (0, 0), (0, 0)))
    x_tm = jnp.transpose(state_p, (1, 0, 2)).reshape(T * Bp, D)    # (T*Bp, D)
    action_p = jnp.pad(action, ((0, Bp - B), (0, 0)))

    # ---- gate-slab weight layout: gate g occupies lanes [g*Hp, g*Hp + H0) ----
    def gate_slabs(w_t):                      # (K, 3*H0) -> (K, 3*Hp)
        cols = []
        for g in range(3):
            blk = w_t[:, g * H0:(g + 1) * H0]
            cols.append(jnp.pad(blk, ((0, 0), (0, Hp - H0))))
        return jnp.concatenate(cols, axis=1)

    def gate_slab_vec(v):                     # (3*H0,) -> (1, 3*Hp)
        cols = [jnp.pad(v[g * H0:(g + 1) * H0], (0, Hp - H0)) for g in range(3)]
        return jnp.concatenate(cols).reshape(1, 3 * Hp)

    w_ih_t = gate_slabs(params["w_ih"].T)                                   # (D, 3Hp)
    w_hh_t = jnp.pad(gate_slabs(params["w_hh"].T), ((0, Hp - H0), (0, 0)))  # (Hp, 3Hp)

    b_ih, b_hh = params["b_ih"], params["b_hh"]
    # Fold b_ih + (r,z parts of b_hh) into the hoisted projection; keep b_hn apart.
    b_gi = gate_slab_vec(
        jnp.concatenate([b_ih[0:H0] + b_hh[0:H0],
                         b_ih[H0:2 * H0] + b_hh[H0:2 * H0],
                         b_ih[2 * H0:3 * H0]]))
    b_hn = jnp.pad(b_hh[2 * H0:3 * H0], (0, Hp - H0)).reshape(1, Hp)

    # FC / Q-head weights, zero-padded so padded lanes contribute exactly 0.
    w_fc_h_t = jnp.pad(params["w_fc"][:, :H0].T,
                       ((0, Hp - H0), (0, H1p - H1)))                       # (Hp, H1p)
    w_fc_a_t = jnp.pad(params["w_fc"][:, H0:].T, ((0, 0), (0, H1p - H1)))   # (A, H1p)
    b_fc = jnp.pad(params["b_fc"], (0, H1p - H1)).reshape(1, H1p)
    w_q_row = jnp.pad(params["w_q"].reshape(-1), (0, H1p - H1)).reshape(1, H1p)
    b_q = params["b_q"].reshape(1, 1)

    vmem = pl.BlockSpec(memory_space=pltpu.MemorySpace.VMEM)
    kernel = functools.partial(_critic_kernel, seq_len=T, batch_pad=Bp, hidden_pad=Hp)

    # All operands are tiny and fully VMEM-resident, so the kernel is grid-less.
    # If B/T scale up: add a grid over B with dimension_semantics=("parallel",) so a
    # v7x chip's two TensorCores split the batch, and cast state/weights to bf16 on
    # v6e/v7x (keeping gate math and preferred_element_type in f32).
    q_pad = pl.pallas_call(
        kernel,
        out_shape=jax.ShapeDtypeStruct((Bp, 1), f32),
        in_specs=[vmem] * 12,
        out_specs=vmem,
        scratch_shapes=[pltpu.VMEM((T * Bp, 3 * Hp), jnp.float32)],
    )(x_tm, action_p, lengths_p,
      w_ih_t, w_hh_t, b_gi, b_hn,
      w_fc_h_t, w_fc_a_t, b_fc, w_q_row, b_q)

    return q_pad[:B]


def critic_reference(state, action, mask, params, hidden_dims):
    """Pure-JAX reference implementing the PyTorch module's forward pass."""
    H0, H1 = hidden_dims
    B, T, D = state.shape
    w_ih, w_hh = params["w_ih"], params["w_hh"]
    b_ih, b_hh = params["b_ih"], params["b_hh"]

    def gru_cell(h, x_t):
        gi = x_t @ w_ih.T + b_ih
        gh = h @ w_hh.T + b_hh
        i_r, i_z, i_n = jnp.split(gi, 3, axis=1)
        h_r, h_z, h_n = jnp.split(gh, 3, axis=1)
        r = jax.nn.sigmoid(i_r + h_r)
        z = jax.nn.sigmoid(i_z + h_z)
        n = jnp.tanh(i_n + r * h_n)
        h_new = (1.0 - z) * n + z * h
        return h_new, h_new

    h0 = jnp.zeros((B, H0), jnp.float32)
    _, outs = jax.lax.scan(gru_cell, h0, jnp.swapaxes(state, 0, 1))
    gru_out = jnp.swapaxes(outs, 0, 1)                      # (B, T, H0)

    lengths = jnp.sum(mask, axis=1).astype(jnp.int32) - 1
    lengths = jnp.where(lengths < 0, lengths + T, lengths)  # PyTorch negative index
    last_hidden = gru_out[jnp.arange(B), lengths]

    combined = jnp.concatenate([last_hidden, action], axis=1)
    hidden = jax.nn.relu(combined @ params["w_fc"].T + params["b_fc"])
    return hidden @ params["w_q"].T + params["b_q"]


if __name__ == "__main__":
    # Small shapes consistent with the module's forward pass.
    B, T = 2, 8            # batch, sequence length
    input_dim = 4
    action_dim = 4
    hidden_dims = [32, 32]
    dropout_rate = 0.1     # identity at inference

    key = jax.random.PRNGKey(0)
    k_state, k_action, k_params = jax.random.split(key, 3)

    state = jax.random.normal(k_state, (B, T, input_dim), jnp.float32)
    action = jax.random.normal(k_action, (B, action_dim), jnp.float32)

    # mask: first L_b timesteps are valid (L = [5, 8] -> lengths = [4, 7])
    valid = jnp.array([5, 8], dtype=jnp.int32)
    mask = (jnp.arange(T)[None, :] < valid[:, None]).astype(jnp.float32)

    params = init_critic_params(k_params, input_dim, action_dim, hidden_dims)

    q = critic_forward(state, action, mask, params, hidden_dims)
    q = jax.block_until_ready(q)
    assert q.shape == (B, 1) and q.dtype == jnp.float32

    q_ref = jax.block_until_ready(
        critic_reference(state, action, mask, params, hidden_dims))
    assert jnp.allclose(q, q_ref, atol=1e-3, rtol=1e-3), (q, q_ref)

    print("KERNEL_OK")
</pallas_src>

<mosaic_0001>
module attributes {stable_mosaic.version = 11 : i64} {
  func.func @_critic_kernel(%arg0: memref<64x4xf32, #tpu.memory_space<vmem>>, %arg1: memref<8x4xf32, #tpu.memory_space<vmem>>, %arg2: memref<8x1xi32, #tpu.memory_space<vmem>>, %arg3: memref<4x384xf32, #tpu.memory_space<vmem>>, %arg4: memref<128x384xf32, #tpu.memory_space<vmem>>, %arg5: memref<1x384xf32, #tpu.memory_space<vmem>>, %arg6: memref<1x128xf32, #tpu.memory_space<vmem>>, %arg7: memref<128x128xf32, #tpu.memory_space<vmem>>, %arg8: memref<4x128xf32, #tpu.memory_space<vmem>>, %arg9: memref<1x128xf32, #tpu.memory_space<vmem>>, %arg10: memref<1x128xf32, #tpu.memory_space<vmem>>, %arg11: memref<1x1xf32, #tpu.memory_space<vmem>>, %arg12: memref<8x1xf32, #tpu.memory_space<vmem>>, %arg13: memref<64x384xf32, #tpu.memory_space<vmem>>) attributes {dimension_semantics = [], scalar_prefetch = 0 : i64, scratch_operands = 1 : i64, tpu.core_type = #tpu.core_type<tc>} {
    %c0 = arith.constant 0 : index
    %c0_0 = arith.constant 0 : index
    %0 = vector.load %arg0[%c0, %c0_0] : memref<64x4xf32, #tpu.memory_space<vmem>>, vector<64x4xf32>
    %c0_1 = arith.constant 0 : index
    %c0_2 = arith.constant 0 : index
    %1 = vector.load %arg3[%c0_1, %c0_2] : memref<4x384xf32, #tpu.memory_space<vmem>>, vector<4x384xf32>
    %cst = arith.constant dense<0.000000e+00> : vector<64x384xf32>
    %2 = tpu.matmul %0, %1, %cst {dimension_numbers = #tpu.dot_dimension_numbers<[1], [0], [0], [1], [0, 0, 1, 1], [], []>} : vector<64x4xf32>, vector<4x384xf32>, vector<64x384xf32> -> vector<64x384xf32>
    %c0_3 = arith.constant 0 : index
    %c0_4 = arith.constant 0 : index
    %3 = vector.load %arg5[%c0_3, %c0_4] : memref<1x384xf32, #tpu.memory_space<vmem>>, vector<1x384xf32>
    %4 = vector.broadcast %3 : vector<1x384xf32> to vector<64x384xf32>
    %5 = arith.addf %2, %4 : vector<64x384xf32>
    %c0_5 = arith.constant 0 : index
    %c0_6 = arith.constant 0 : index
    %6 = vector.load %arg13[%c0_5, %c0_6] : memref<64x384xf32, #tpu.memory_space<vmem>>, vector<64x384xf32>
    tpu.vector_store %arg13[%c0_5, %c0_6], %5 {strides = array<i32>} : memref<64x384xf32, #tpu.memory_space<vmem>>, vector<64x384xf32>,
    %c0_7 = arith.constant 0 : index
    %c0_8 = arith.constant 0 : index
    %7 = vector.load %arg4[%c0_7, %c0_8] : memref<128x384xf32, #tpu.memory_space<vmem>>, vector<128x384xf32>
    %c0_9 = arith.constant 0 : index
    %c0_10 = arith.constant 0 : index
    %8 = vector.load %arg6[%c0_9, %c0_10] : memref<1x128xf32, #tpu.memory_space<vmem>>, vector<1x128xf32>
    %9 = vector.shape_cast %8 : vector<1x128xf32> to vector<1x128xf32>
    %10 = vector.broadcast %9 : vector<1x128xf32> to vector<8x128xf32>
    %c0_11 = arith.constant 0 : index
    %c0_12 = arith.constant 0 : index
    %11 = vector.load %arg2[%c0_11, %c0_12] : memref<8x1xi32, #tpu.memory_space<vmem>>, vector<8x1xi32>
    %cst_13 = arith.constant 0.000000e+00 : f32
    %12 = vector.broadcast %cst_13 : f32 to vector<8x128xf32>
    %cst_14 = arith.constant 0.000000e+00 : f32
    %13 = vector.broadcast %cst_14 : f32 to vector<8x128xf32>
    %c0_15 = arith.constant 0 : index
    %c0_16 = arith.constant 0 : index
    %14 = vector.load %arg13[%c0_15, %c0_16] : memref<64x384xf32, #tpu.memory_space<vmem>>, vector<8x384xf32>
    %cst_17 = arith.constant dense<0.000000e+00> : vector<8x384xf32>
    %15 = tpu.matmul %12, %7, %cst_17 {dimension_numbers = #tpu.dot_dimension_numbers<[1], [0], [0], [1], [0, 0, 1, 1], [], []>} : vector<8x128xf32>, vector<128x384xf32>, vector<8x384xf32> -> vector<8x384xf32>
    %16 = vector.extract_strided_slice %14 {offsets = [0, 0], sizes = [8, 128], strides = [1, 1]} : vector<8x384xf32> to vector<8x128xf32>
    %17 = vector.extract_strided_slice %14 {offsets = [0, 128], sizes = [8, 128], strides = [1, 1]} : vector<8x384xf32> to vector<8x128xf32>
    %18 = vector.extract_strided_slice %14 {offsets = [0, 256], sizes = [8, 128], strides = [1, 1]} : vector<8x384xf32> to vector<8x128xf32>
    %19 = vector.extract_strided_slice %15 {offsets = [0, 0], sizes = [8, 128], strides = [1, 1]} : vector<8x384xf32> to vector<8x128xf32>
    %20 = vector.extract_strided_slice %15 {offsets = [0, 128], sizes = [8, 128], strides = [1, 1]} : vector<8x384xf32> to vector<8x128xf32>
    %21 = vector.extract_strided_slice %15 {offsets = [0, 256], sizes = [8, 128], strides = [1, 1]} : vector<8x384xf32> to vector<8x128xf32>
    %22 = arith.addf %16, %19 : vector<8x128xf32>
    %23 = arith.negf %22 : vector<8x128xf32>
    %24 = math.exp %23 : vector<8x128xf32>
    %cst_18 = arith.constant 1.000000e+00 : f32
    %25 = vector.broadcast %cst_18 : f32 to vector<8x128xf32>
    %26 = arith.addf %25, %24 : vector<8x128xf32>
    %27 = arith.divf %25, %26 : vector<8x128xf32>
    %28 = arith.addf %17, %20 : vector<8x128xf32>
    %29 = arith.negf %28 : vector<8x128xf32>
    %30 = math.exp %29 : vector<8x128xf32>
    %cst_19 = arith.constant 1.000000e+00 : f32
    %31 = vector.broadcast %cst_19 : f32 to vector<8x128xf32>
    %32 = arith.addf %31, %30 : vector<8x128xf32>
    %33 = arith.divf %31, %32 : vector<8x128xf32>
    %34 = arith.addf %21, %10 : vector<8x128xf32>
    %35 = arith.mulf %27, %34 : vector<8x128xf32>
    %36 = arith.addf %18, %35 : vector<8x128xf32>
    %37 = math.tanh %36 : vector<8x128xf32>
    %38 = arith.subf %12, %37 : vector<8x128xf32>
    %39 = arith.mulf %33, %38 : vector<8x128xf32>
    %40 = arith.addf %37, %39 : vector<8x128xf32>
    %c0_i32 = arith.constant 0 : i32
    %41 = vector.broadcast %c0_i32 : i32 to vector<8x1xi32>
    %42 = arith.cmpi eq, %11, %41 : vector<8x1xi32>
    %43 = vector.shape_cast %42 : vector<8x1xi1> to vector<8x1xi1>
    %44 = vector.broadcast %43 : vector<8x1xi1> to vector<8x128xi1>
    %45 = arith.select %44, %40, %13 : vector<8x128xi1>, vector<8x128xf32>
    %c8 = arith.constant 8 : index
    %c0_20 = arith.constant 0 : index
    %46 = vector.load %arg13[%c8, %c0_20] : memref<64x384xf32, #tpu.memory_space<vmem>>, vector<8x384xf32>
    %cst_21 = arith.constant dense<0.000000e+00> : vector<8x384xf32>
    %47 = tpu.matmul %40, %7, %cst_21 {dimension_numbers = #tpu.dot_dimension_numbers<[1], [0], [0], [1], [0, 0, 1, 1], [], []>} : vector<8x128xf32>, vector<128x384xf32>, vector<8x384xf32> -> vector<8x384xf32>
    %48 = vector.extract_strided_slice %46 {offsets = [0, 0], sizes = [8, 128], strides = [1, 1]} : vector<8x384xf32> to vector<8x128xf32>
    %49 = vector.extract_strided_slice %46 {offsets = [0, 128], sizes = [8, 128], strides = [1, 1]} : vector<8x384xf32> to vector<8x128xf32>
    %50 = vector.extract_strided_slice %46 {offsets = [0, 256], sizes = [8, 128], strides = [1, 1]} : vector<8x384xf32> to vector<8x128xf32>
    %51 = vector.extract_strided_slice %47 {offsets = [0, 0], sizes = [8, 128], strides = [1, 1]} : vector<8x384xf32> to vector<8x128xf32>
    %52 = vector.extract_strided_slice %47 {offsets = [0, 128], sizes = [8, 128], strides = [1, 1]} : vector<8x384xf32> to vector<8x128xf32>
    %53 = vector.extract_strided_slice %47 {offsets = [0, 256], sizes = [8, 128], strides = [1, 1]} : vector<8x384xf32> to vector<8x128xf32>
    %54 = arith.addf %48, %51 : vector<8x128xf32>
    %55 = arith.negf %54 : vector<8x128xf32>
    %56 = math.exp %55 : vector<8x128xf32>
    %cst_22 = arith.constant 1.000000e+00 : f32
    %57 = vector.broadcast %cst_22 : f32 to vector<8x128xf32>
    %58 = arith.addf %57, %56 : vector<8x128xf32>
    %59 = arith.divf %57, %58 : vector<8x128xf32>
    %60 = arith.addf %49, %52 : vector<8x128xf32>
    %61 = arith.negf %60 : vector<8x128xf32>
    %62 = math.exp %61 : vector<8x128xf32>
    %cst_23 = arith.constant 1.000000e+00 : f32
    %63 = vector.broadcast %cst_23 : f32 to vector<8x128xf32>
    %64 = arith.addf %63, %62 : vector<8x128xf32>
    %65 = arith.divf %63, %64 : vector<8x128xf32>
    %66 = arith.addf %53, %10 : vector<8x128xf32>
    %67 = arith.mulf %59, %66 : vector<8x128xf32>
    %68 = arith.addf %50, %67 : vector<8x128xf32>
    %69 = math.tanh %68 : vector<8x128xf32>
    %70 = arith.subf %40, %69 : vector<8x128xf32>
    %71 = arith.mulf %65, %70 : vector<8x128xf32>
    %72 = arith.addf %69, %71 : vector<8x128xf32>
    %c1_i32 = arith.constant 1 : i32
    %73 = vector.broadcast %c1_i32 : i32 to vector<8x1xi32>
    %74 = arith.cmpi eq, %11, %73 : vector<8x1xi32>
    %75 = vector.shape_cast %74 : vector<8x1xi1> to vector<8x1xi1>
    %76 = vector.broadcast %75 : vector<8x1xi1> to vector<8x128xi1>
    %77 = arith.select %76, %72, %45 : vector<8x128xi1>, vector<8x128xf32>
    %c16 = arith.constant 16 : index
    %c0_24 = arith.constant 0 : index
    %78 = vector.load %arg13[%c16, %c0_24] : memref<64x384xf32, #tpu.memory_space<vmem>>, vector<8x384xf32>
    %cst_25 = arith.constant dense<0.000000e+00> : vector<8x384xf32>
    %79 = tpu.matmul %72, %7, %cst_25 {dimension_numbers = #tpu.dot_dimension_numbers<[1], [0], [0], [1], [0, 0, 1, 1], [], []>} : vector<8x128xf32>, vector<128x384xf32>, vector<8x384xf32> -> vector<8x384xf32>
    %80 = vector.extract_strided_slice %78 {offsets = [0, 0], sizes = [8, 128], strides = [1, 1]} : vector<8x384xf32> to vector<8x128xf32>
    %81 = vector.extract_strided_slice %78 {offsets = [0, 128], sizes = [8, 128], strides = [1, 1]} : vector<8x384xf32> to vector<8x128xf32>
    %82 = vector.extract_strided_slice %78 {offsets = [0, 256], sizes = [8, 128], strides = [1, 1]} : vector<8x384xf32> to vector<8x128xf32>
    %83 = vector.extract_strided_slice %79 {offsets = [0, 0], sizes = [8, 128], strides = [1, 1]} : vector<8x384xf32> to vector<8x128xf32>
    %84 = vector.extract_strided_slice %79 {offsets = [0, 128], sizes = [8, 128], strides = [1, 1]} : vector<8x384xf32> to vector<8x128xf32>
    %85 = vector.extract_strided_slice %79 {offsets = [0, 256], sizes = [8, 128], strides = [1, 1]} : vector<8x384xf32> to vector<8x128xf32>
    %86 = arith.addf %80, %83 : vector<8x128xf32>
    %87 = arith.negf %86 : vector<8x128xf32>
    %88 = math.exp %87 : vector<8x128xf32>
    %cst_26 = arith.constant 1.000000e+00 : f32
    %89 = vector.broadcast %cst_26 : f32 to vector<8x128xf32>
    %90 = arith.addf %89, %88 : vector<8x128xf32>
    %91 = arith.divf %89, %90 : vector<8x128xf32>
    %92 = arith.addf %81, %84 : vector<8x128xf32>
    %93 = arith.negf %92 : vector<8x128xf32>
    %94 = math.exp %93 : vector<8x128xf32>
    %cst_27 = arith.constant 1.000000e+00 : f32
    %95 = vector.broadcast %cst_27 : f32 to vector<8x128xf32>
    %96 = arith.addf %95, %94 : vector<8x128xf32>
    %97 = arith.divf %95, %96 : vector<8x128xf32>
    %98 = arith.addf %85, %10 : vector<8x128xf32>
    %99 = arith.mulf %91, %98 : vector<8x128xf32>
    %100 = arith.addf %82, %99 : vector<8x128xf32>
    %101 = math.tanh %100 : vector<8x128xf32>
    %102 = arith.subf %72, %101 : vector<8x128xf32>
    %103 = arith.mulf %97, %102 : vector<8x128xf32>
    %104 = arith.addf %101, %103 : vector<8x128xf32>
    %c2_i32 = arith.constant 2 : i32
    %105 = vector.broadcast %c2_i32 : i32 to vector<8x1xi32>
    %106 = arith.cmpi eq, %11, %105 : vector<8x1xi32>
    %107 = vector.shape_cast %106 : vector<8x1xi1> to vector<8x1xi1>
    %108 = vector.broadcast %107 : vector<8x1xi1> to vector<8x128xi1>
    %109 = arith.select %108, %104, %77 : vector<8x128xi1>, vector<8x128xf32>
    %c24 = arith.constant 24 : index
    %c0_28 = arith.constant 0 : index
    %110 = vector.load %arg13[%c24, %c0_28] : memref<64x384xf32, #tpu.memory_space<vmem>>, vector<8x384xf32>
    %cst_29 = arith.constant dense<0.000000e+00> : vector<8x384xf32>
    %111 = tpu.matmul %104, %7, %cst_29 {dimension_numbers = #tpu.dot_dimension_numbers<[1], [0], [0], [1], [0, 0, 1, 1], [], []>} : vector<8x128xf32>, vector<128x384xf32>, vector<8x384xf32> -> vector<8x384xf32>
    %112 = vector.extract_strided_slice %110 {offsets = [0, 0], sizes = [8, 128], strides = [1, 1]} : vector<8x384xf32> to vector<8x128xf32>
    %113 = vector.extract_strided_slice %110 {offsets = [0, 128], sizes = [8, 128], strides = [1, 1]} : vector<8x384xf32> to vector<8x128xf32>
    %114 = vector.extract_strided_slice %110 {offsets = [0, 256], sizes = [8, 128], strides = [1, 1]} : vector<8x384xf32> to vector<8x128xf32>
    %115 = vector.extract_strided_slice %111 {offsets = [0, 0], sizes = [8, 128], strides = [1, 1]} : vector<8x384xf32> to vector<8x128xf32>
    %116 = vector.extract_strided_slice %111 {offsets = [0, 128], sizes = [8, 128], strides = [1, 1]} : vector<8x384xf32> to vector<8x128xf32>
    %117 = vector.extract_strided_slice %111 {offsets = [0, 256], sizes = [8, 128], strides = [1, 1]} : vector<8x384xf32> to vector<8x128xf32>
    %118 = arith.addf %112, %115 : vector<8x128xf32>
    %119 = arith.negf %118 : vector<8x128xf32>
    %120 = math.exp %119 : vector<8x128xf32>
    %cst_30 = arith.constant 1.000000e+00 : f32
    %121 = vector.broadcast %cst_30 : f32 to vector<8x128xf32>
    %122 = arith.addf %121, %120 : vector<8x128xf32>
    %123 = arith.divf %121, %122 : vector<8x128xf32>
    %124 = arith.addf %113, %116 : vector<8x128xf32>
    %125 = arith.negf %124 : vector<8x128xf32>
    %126 = math.exp %125 : vector<8x128xf32>
    %cst_31 = arith.constant 1.000000e+00 : f32
    %127 = vector.broadcast %cst_31 : f32 to vector<8x128xf32>
    %128 = arith.addf %127, %126 : vector<8x128xf32>
    %129 = arith.divf %127, %128 : vector<8x128xf32>
    %130 = arith.addf %117, %10 : vector<8x128xf32>
    %131 = arith.mulf %123, %130 : vector<8x128xf32>
    %132 = arith.addf %114, %131 : vector<8x128xf32>
    %133 = math.tanh %132 : vector<8x128xf32>
    %134 = arith.subf %104, %133 : vector<8x128xf32>
    %135 = arith.mulf %129, %134 : vector<8x128xf32>
    %136 = arith.addf %133, %135 : vector<8x128xf32>
    %c3_i32 = arith.constant 3 : i32
    %137 = vector.broadcast %c3_i32 : i32 to vector<8x1xi32>
    %138 = arith.cmpi eq, %11, %137 : vector<8x1xi32>
    %139 = vector.shape_cast %138 : vector<8x1xi1> to vector<8x1xi1>
    %140 = vector.broadcast %139 : vector<8x1xi1> to vector<8x128xi1>
    %141 = arith.select %140, %136, %109 : vector<8x128xi1>, vector<8x128xf32>
    %c32 = arith.constant 32 : index
    %c0_32 = arith.constant 0 : index
    %142 = vector.load %arg13[%c32, %c0_32] : memref<64x384xf32, #tpu.memory_space<vmem>>, vector<8x384xf32>
    %cst_33 = arith.constant dense<0.000000e+00> : vector<8x384xf32>
    %143 = tpu.matmul %136, %7, %cst_33 {dimension_numbers = #tpu.dot_dimension_numbers<[1], [0], [0], [1], [0, 0, 1, 1], [], []>} : vector<8x128xf32>, vector<128x384xf32>, vector<8x384xf32> -> vector<8x384xf32>
    %144 = vector.extract_strided_slice %142 {offsets = [0, 0], sizes = [8, 128], strides = [1, 1]} : vector<8x384xf32> to vector<8x128xf32>
    %145 = vector.extract_strided_slice %142 {offsets = [0, 128], sizes = [8, 128], strides = [1, 1]} : vector<8x384xf32> to vector<8x128xf32>
    %146 = vector.extract_strided_slice %142 {offsets = [0, 256], sizes = [8, 128], strides = [1, 1]} : vector<8x384xf32> to vector<8x128xf32>
    %147 = vector.extract_strided_slice %143 {offsets = [0, 0], sizes = [8, 128], strides = [1, 1]} : vector<8x384xf32> to vector<8x128xf32>
    %148 = vector.extract_strided_slice %143 {offsets = [0, 128], sizes = [8, 128], strides = [1, 1]} : vector<8x384xf32> to vector<8x128xf32>
    %149 = vector.extract_strided_slice %143 {offsets = [0, 256], sizes = [8, 128], strides = [1, 1]} : vector<8x384xf32> to vector<8x128xf32>
    %150 = arith.addf %144, %147 : vector<8x128xf32>
    %151 = arith.negf %150 : vector<8x128xf32>
    %152 = math.exp %151 : vector<8x128xf32>
    %cst_34 = arith.constant 1.000000e+00 : f32
    %153 = vector.broadcast %cst_34 : f32 to vector<8x128xf32>
    %154 = arith.addf %153, %152 : vector<8x128xf32>
    %155 = arith.divf %153, %154 : vector<8x128xf32>
    %156 = arith.addf %145, %148 : vector<8x128xf32>
    %157 = arith.negf %156 : vector<8x128xf32>
    %158 = math.exp %157 : vector<8x128xf32>
    %cst_35 = arith.constant 1.000000e+00 : f32
    %159 = vector.broadcast %cst_35 : f32 to vector<8x128xf32>
    %160 = arith.addf %159, %158 : vector<8x128xf32>
    %161 = arith.divf %159, %160 : vector<8x128xf32>
    %162 = arith.addf %149, %10 : vector<8x128xf32>
    %163 = arith.mulf %155, %162 : vector<8x128xf32>
    %164 = arith.addf %146, %163 : vector<8x128xf32>
    %165 = math.tanh %164 : vector<8x128xf32>
    %166 = arith.subf %136, %165 : vector<8x128xf32>
    %167 = arith.mulf %161, %166 : vector<8x128xf32>
    %168 = arith.addf %165, %167 : vector<8x128xf32>
    %c4_i32 = arith.constant 4 : i32
    %169 = vector.broadcast %c4_i32 : i32 to vector<8x1xi32>
    %170 = arith.cmpi eq, %11, %169 : vector<8x1xi32>
    %171 = vector.shape_cast %170 : vector<8x1xi1> to vector<8x1xi1>
    %172 = vector.broadcast %171 : vector<8x1xi1> to vector<8x128xi1>
    %173 = arith.select %172, %168, %141 : vector<8x128xi1>, vector<8x128xf32>
    %c40 = arith.constant 40 : index
    %c0_36 = arith.constant 0 : index
    %174 = vector.load %arg13[%c40, %c0_36] : memref<64x384xf32, #tpu.memory_space<vmem>>, vector<8x384xf32>
    %cst_37 = arith.constant dense<0.000000e+00> : vector<8x384xf32>
    %175 = tpu.matmul %168, %7, %cst_37 {dimension_numbers = #tpu.dot_dimension_numbers<[1], [0], [0], [1], [0, 0, 1, 1], [], []>} : vector<8x128xf32>, vector<128x384xf32>, vector<8x384xf32> -> vector<8x384xf32>
    %176 = vector.extract_strided_slice %174 {offsets = [0, 0], sizes = [8, 128], strides = [1, 1]} : vector<8x384xf32> to vector<8x128xf32>
    %177 = vector.extract_strided_slice %174 {offsets = [0, 128], sizes = [8, 128], strides = [1, 1]} : vector<8x384xf32> to vector<8x128xf32>
    %178 = vector.extract_strided_slice %174 {offsets = [0, 256], sizes = [8, 128], strides = [1, 1]} : vector<8x384xf32> to vector<8x128xf32>
    %179 = vector.extract_strided_slice %175 {offsets = [0, 0], sizes = [8, 128], strides = [1, 1]} : vector<8x384xf32> to vector<8x128xf32>
    %180 = vector.extract_strided_slice %175 {offsets = [0, 128], sizes = [8, 128], strides = [1, 1]} : vector<8x384xf32> to vector<8x128xf32>
    %181 = vector.extract_strided_slice %175 {offsets = [0, 256], sizes = [8, 128], strides = [1, 1]} : vector<8x384xf32> to vector<8x128xf32>
    %182 = arith.addf %176, %179 : vector<8x128xf32>
    %183 = arith.negf %182 : vector<8x128xf32>
    %184 = math.exp %183 : vector<8x128xf32>
    %cst_38 = arith.constant 1.000000e+00 : f32
    %185 = vector.broadcast %cst_38 : f32 to vector<8x128xf32>
    %186 = arith.addf %185, %184 : vector<8x128xf32>
    %187 = arith.divf %185, %186 : vector<8x128xf32>
    %188 = arith.addf %177, %180 : vector<8x128xf32>
    %189 = arith.negf %188 : vector<8x128xf32>
    %190 = math.exp %189 : vector<8x128xf32>
    %cst_39 = arith.constant 1.000000e+00 : f32
    %191 = vector.broadcast %cst_39 : f32 to vector<8x128xf32>
    %192 = arith.addf %191, %190 : vector<8x128xf32>
    %193 = arith.divf %191, %192 : vector<8x128xf32>
    %194 = arith.addf %181, %10 : vector<8x128xf32>
    %195 = arith.mulf %187, %194 : vector<8x128xf32>
    %196 = arith.addf %178, %195 : vector<8x128xf32>
    %197 = math.tanh %196 : vector<8x128xf32>
    %198 = arith.subf %168, %197 : vector<8x128xf32>
    %199 = arith.mulf %193, %198 : vector<8x128xf32>
    %200 = arith.addf %197, %199 : vector<8x128xf32>
    %c5_i32 = arith.constant 5 : i32
    %201 = vector.broadcast %c5_i32 : i32 to vector<8x1xi32>
    %202 = arith.cmpi eq, %11, %201 : vector<8x1xi32>
    %203 = vector.shape_cast %202 : vector<8x1xi1> to vector<8x1xi1>
    %204 = vector.broadcast %203 : vector<8x1xi1> to vector<8x128xi1>
    %205 = arith.select %204, %200, %173 : vector<8x128xi1>, vector<8x128xf32>
    %c48 = arith.constant 48 : index
    %c0_40 = arith.constant 0 : index
    %206 = vector.load %arg13[%c48, %c0_40] : memref<64x384xf32, #tpu.memory_space<vmem>>, vector<8x384xf32>
    %cst_41 = arith.constant dense<0.000000e+00> : vector<8x384xf32>
    %207 = tpu.matmul %200, %7, %cst_41 {dimension_numbers = #tpu.dot_dimension_numbers<[1], [0], [0], [1], [0, 0, 1, 1], [], []>} : vector<8x128xf32>, vector<128x384xf32>, vector<8x384xf32> -> vector<8x384xf32>
    %208 = vector.extract_strided_slice %206 {offsets = [0, 0], sizes = [8, 128], strides = [1, 1]} : vector<8x384xf32> to vector<8x128xf32>
    %209 = vector.extract_strided_slice %206 {offsets = [0, 128], sizes = [8, 128], strides = [1, 1]} : vector<8x384xf32> to vector<8x128xf32>
    %210 = vector.extract_strided_slice %206 {offsets = [0, 256], sizes = [8, 128], strides = [1, 1]} : vector<8x384xf32> to vector<8x128xf32>
    %211 = vector.extract_strided_slice %207 {offsets = [0, 0], sizes = [8, 128], strides = [1, 1]} : vector<8x384xf32> to vector<8x128xf32>
    %212 = vector.extract_strided_slice %207 {offsets = [0, 128], sizes = [8, 128], strides = [1, 1]} : vector<8x384xf32> to vector<8x128xf32>
    %213 = vector.extract_strided_slice %207 {offsets = [0, 256], sizes = [8, 128], strides = [1, 1]} : vector<8x384xf32> to vector<8x128xf32>
    %214 = arith.addf %208, %211 : vector<8x128xf32>
    %215 = arith.negf %214 : vector<8x128xf32>
    %216 = math.exp %215 : vector<8x128xf32>
    %cst_42 = arith.constant 1.000000e+00 : f32
    %217 = vector.broadcast %cst_42 : f32 to vector<8x128xf32>
    %218 = arith.addf %217, %216 : vector<8x128xf32>
    %219 = arith.divf %217, %218 : vector<8x128xf32>
    %220 = arith.addf %209, %212 : vector<8x128xf32>
    %221 = arith.negf %220 : vector<8x128xf32>
    %222 = math.exp %221 : vector<8x128xf32>
    %cst_43 = arith.constant 1.000000e+00 : f32
    %223 = vector.broadcast %cst_43 : f32 to vector<8x128xf32>
    %224 = arith.addf %223, %222 : vector<8x128xf32>
    %225 = arith.divf %223, %224 : vector<8x128xf32>
    %226 = arith.addf %213, %10 : vector<8x128xf32>
    %227 = arith.mulf %219, %226 : vector<8x128xf32>
    %228 = arith.addf %210, %227 : vector<8x128xf32>
    %229 = math.tanh %228 : vector<8x128xf32>
    %230 = arith.subf %200, %229 : vector<8x128xf32>
    %231 = arith.mulf %225, %230 : vector<8x128xf32>
    %232 = arith.addf %229, %231 : vector<8x128xf32>
    %c6_i32 = arith.constant 6 : i32
    %233 = vector.broadcast %c6_i32 : i32 to vector<8x1xi32>
    %234 = arith.cmpi eq, %11, %233 : vector<8x1xi32>
    %235 = vector.shape_cast %234 : vector<8x1xi1> to vector<8x1xi1>
    %236 = vector.broadcast %235 : vector<8x1xi1> to vector<8x128xi1>
    %237 = arith.select %236, %232, %205 : vector<8x128xi1>, vector<8x128xf32>
    %c56 = arith.constant 56 : index
    %c0_44 = arith.constant 0 : index
    %238 = vector.load %arg13[%c56, %c0_44] : memref<64x384xf32, #tpu.memory_space<vmem>>, vector<8x384xf32>
    %cst_45 = arith.constant dense<0.000000e+00> : vector<8x384xf32>
    %239 = tpu.matmul %232, %7, %cst_45 {dimension_numbers = #tpu.dot_dimension_numbers<[1], [0], [0], [1], [0, 0, 1, 1], [], []>} : vector<8x128xf32>, vector<128x384xf32>, vector<8x384xf32> -> vector<8x384xf32>
    %240 = vector.extract_strided_slice %238 {offsets = [0, 0], sizes = [8, 128], strides = [1, 1]} : vector<8x384xf32> to vector<8x128xf32>
    %241 = vector.extract_strided_slice %238 {offsets = [0, 128], sizes = [8, 128], strides = [1, 1]} : vector<8x384xf32> to vector<8x128xf32>
    %242 = vector.extract_strided_slice %238 {offsets = [0, 256], sizes = [8, 128], strides = [1, 1]} : vector<8x384xf32> to vector<8x128xf32>
    %243 = vector.extract_strided_slice %239 {offsets = [0, 0], sizes = [8, 128], strides = [1, 1]} : vector<8x384xf32> to vector<8x128xf32>
    %244 = vector.extract_strided_slice %239 {offsets = [0, 128], sizes = [8, 128], strides = [1, 1]} : vector<8x384xf32> to vector<8x128xf32>
    %245 = vector.extract_strided_slice %239 {offsets = [0, 256], sizes = [8, 128], strides = [1, 1]} : vector<8x384xf32> to vector<8x128xf32>
    %246 = arith.addf %240, %243 : vector<8x128xf32>
    %247 = arith.negf %246 : vector<8x128xf32>
    %248 = math.exp %247 : vector<8x128xf32>
    %cst_46 = arith.constant 1.000000e+00 : f32
    %249 = vector.broadcast %cst_46 : f32 to vector<8x128xf32>
    %250 = arith.addf %249, %248 : vector<8x128xf32>
    %251 = arith.divf %249, %250 : vector<8x128xf32>
    %252 = arith.addf %241, %244 : vector<8x128xf32>
    %253 = arith.negf %252 : vector<8x128xf32>
    %254 = math.exp %253 : vector<8x128xf32>
    %cst_47 = arith.constant 1.000000e+00 : f32
    %255 = vector.broadcast %cst_47 : f32 to vector<8x128xf32>
    %256 = arith.addf %255, %254 : vector<8x128xf32>
    %257 = arith.divf %255, %256 : vector<8x128xf32>
    %258 = arith.addf %245, %10 : vector<8x128xf32>
    %259 = arith.mulf %251, %258 : vector<8x128xf32>
    %260 = arith.addf %242, %259 : vector<8x128xf32>
    %261 = math.tanh %260 : vector<8x128xf32>
    %262 = arith.subf %232, %261 : vector<8x128xf32>
    %263 = arith.mulf %257, %262 : vector<8x128xf32>
    %264 = arith.addf %261, %263 : vector<8x128xf32>
    %c7_i32 = arith.constant 7 : i32
    %265 = vector.broadcast %c7_i32 : i32 to vector<8x1xi32>
    %266 = arith.cmpi eq, %11, %265 : vector<8x1xi32>
    %267 = vector.shape_cast %266 : vector<8x1xi1> to vector<8x1xi1>
    %268 = vector.broadcast %267 : vector<8x1xi1> to vector<8x128xi1>
    %269 = arith.select %268, %264, %237 : vector<8x128xi1>, vector<8x128xf32>
    %c0_48 = arith.constant 0 : index
    %c0_49 = arith.constant 0 : index
    %270 = vector.load %arg7[%c0_48, %c0_49] : memref<128x128xf32, #tpu.memory_space<vmem>>, vector<128x128xf32>
    %cst_50 = arith.constant dense<0.000000e+00> : vector<8x128xf32>
    %271 = tpu.matmul %269, %270, %cst_50 {dimension_numbers = #tpu.dot_dimension_numbers<[1], [0], [0], [1], [0, 0, 1, 1], [], []>} : vector<8x128xf32>, vector<128x128xf32>, vector<8x128xf32> -> vector<8x128xf32>
    %c0_51 = arith.constant 0 : index
    %c0_52 = arith.constant 0 : index
    %272 = vector.load %arg1[%c0_51, %c0_52] : memref<8x4xf32, #tpu.memory_space<vmem>>, vector<8x4xf32>
    %c0_53 = arith.constant 0 : index
    %c0_54 = arith.constant 0 : index
    %273 = vector.load %arg8[%c0_53, %c0_54] : memref<4x128xf32, #tpu.memory_space<vmem>>, vector<4x128xf32>
    %cst_55 = arith.constant dense<0.000000e+00> : vector<8x128xf32>
    %274 = tpu.matmul %272, %273, %cst_55 {dimension_numbers = #tpu.dot_dimension_numbers<[1], [0], [0], [1], [0, 0, 1, 1], [], []>} : vector<8x4xf32>, vector<4x128xf32>, vector<8x128xf32> -> vector<8x128xf32>
    %275 = arith.addf %271, %274 : vector<8x128xf32>
    %c0_56 = arith.constant 0 : index
    %c0_57 = arith.constant 0 : index
    %276 = vector.load %arg9[%c0_56, %c0_57] : memref<1x128xf32, #tpu.memory_space<vmem>>, vector<1x128xf32>
    %277 = vector.broadcast %276 : vector<1x128xf32> to vector<8x128xf32>
    %278 = arith.addf %275, %277 : vector<8x128xf32>
    %cst_58 = arith.constant 0.000000e+00 : f32
    %279 = vector.broadcast %cst_58 : f32 to vector<8x128xf32>
    %280 = arith.maximumf %278, %279 : vector<8x128xf32>
    %c0_59 = arith.constant 0 : index
    %c0_60 = arith.constant 0 : index
    %281 = vector.load %arg10[%c0_59, %c0_60] : memref<1x128xf32, #tpu.memory_space<vmem>>, vector<1x128xf32>
    %282 = vector.broadcast %281 : vector<1x128xf32> to vector<8x128xf32>
    %283 = arith.mulf %280, %282 : vector<8x128xf32>
    %cst_61 = arith.constant dense<0.000000e+00> : vector<8xf32>
    %284 = vector.multi_reduction <add>, %283, %cst_61 [1] : vector<8x128xf32> to vector<8xf32>
    %285 = vector.shape_cast %284 : vector<8xf32> to vector<8x1xf32>
    %c0_62 = arith.constant 0 : index
    %c0_63 = arith.constant 0 : index
    %286 = vector.load %arg11[%c0_62, %c0_63] : memref<1x1xf32, #tpu.memory_space<vmem>>, vector<1x1xf32>
    %287 = vector.broadcast %286 : vector<1x1xf32> to vector<8x1xf32>
    %288 = arith.addf %285, %287 : vector<8x1xf32>
    %c0_64 = arith.constant 0 : index
    %c0_65 = arith.constant 0 : index
    %289 = vector.load %arg12[%c0_64, %c0_65] : memref<8x1xf32, #tpu.memory_space<vmem>>, vector<8x1xf32>
    tpu.vector_store %arg12[%c0_64, %c0_65], %288 {strides = array<i32>} : memref<8x1xf32, #tpu.memory_space<vmem>>, vector<8x1xf32>,
    return
  }
}

</mosaic_0001>

<bundles_post_ra>
// kernel: tpu_custom_call.1
= control target key start
LH: loop header
LB: loop body
LE: loop exit
PB: predicated region body
PF: predicated region fallthrough
CT: control target
= control target key end

     0   :  { %s3832_s0 = inlined_call_operand.vmem [shape: f32[64,4], index: 0, kind: input, shape index: {}]   ;;  %s3833_s1 = inlined_call_operand.vmem [shape: f32[8,4], index: 1, kind: input, shape index: {}]   ;;  %s3834_s2 = inlined_call_operand.vmem [shape: s32[8,1], index: 2, kind: input, shape index: {}]   ;;  %s3835_s3 = inlined_call_operand.vmem [shape: f32[4,384], index: 3, kind: input, shape index: {}]   ;;  %s3836_s4 = inlined_call_operand.hbm [shape: f32[128,384], index: 4, kind: input, shape index: {}]   ;;  %s3837_s5 = inlined_call_operand.vmem [shape: f32[1,384], index: 5, kind: input, shape index: {}]   ;;  %s3838_s6 = inlined_call_operand.vmem [shape: f32[1,128], index: 6, kind: input, shape index: {}]   ;;  %s3839_s7 = inlined_call_operand.hbm [shape: f32[128,128], index: 7, kind: input, shape index: {}]   ;;  %s3840_s8 = inlined_call_operand.vmem [shape: f32[4,128], index: 8, kind: input, shape index: {}]   ;;  %s3841_s9 = inlined_call_operand.vmem [shape: f32[1,128], index: 9, kind: input, shape index: {}]   ;;  %s3842_s10 = inlined_call_operand.vmem [shape: f32[1,128], index: 10, kind: input, shape index: {}]   ;;  %s3843_s11 = inlined_call_operand.<no memory space> [shape: f32[1,1], index: 11, kind: input, shape index: {}]   ;;  %s3844_s12 = inlined_call_operand.vmem [shape: f32[8,1], index: 12, kind: output, shape index: {}]  }
   0x1   :  { %v17_v0 = vstv %s3843_s11 }
   0x2   :  { %18 = vst [vmem:[#allocation3] sm:$0x1] %v17_v0 }
   0x3   :  { %19 = vsyncpa [#allocation5], 0 }
   0x4   :  { %20 = vsyncpa [#allocation7], 0  ;;  %s3190_s23 = smov [#allocation4]   ;;  %s3142_s27 = scalar_lea.hbm %s3836_s4, 6144 }
   0x5   :  { %s34_s24 = sshll.u32 %s3190_s23, 4  ;;  %p3143_p0 = scmp.ne.s32.totalorder %s3836_s4, %s3142_s27  ;;  %s35_s24 = int_to_ptr.vmem [resolvable:$true] %s34_s24 }
   0x6   :  { %p3146_p1 = scmp.lt.u32.totalorder %s3142_s27, %s3836_s4 }
   0x8   :  { %p3148_p2 = pnand %p3146_p1, %p3143_p0 }
   0xa   :  { %3151 = shalt.err (!%p3148_p2)
}
   0xb   :  { %s3152_s11 = scalar_lea.vmem %s35_s24, 6144  ;;  %p3157_p4 = scmp.lt.s32.totalorder %s35_s24, %s35_s24 }
   0xc   :  { %p3153_p3 = scmp.ne.s32.totalorder %s35_s24, %s3152_s11  ;;  %p3158_p5 = scmp.lt.s32.totalorder %s3152_s11, %s3152_s11 }
   0xe   :  { %p3159_p6 = por %p3158_p5, %p3157_p4 }
  0x10   :  { %p3160_p7 = pnand %p3159_p6, %p3153_p3 }
  0x12   :  { %3163 = shalt.err (!%p3160_p7)
}
  0x13   :  { %s3191_s14 = smov 384   ;;  %s3192_s15 = smov 24  }
  0x14   :  { %40 = dma.hbm_to_vmem [thread:$0]  %s3836_s4, 6144, %s35_s24, [#allocation5], %s3191_s14, %s3191_s14, %s3192_s15  }
  0x15   :  { %s3193_s18 = smov [#allocation6]   ;;  %s3164_s22 = scalar_lea.hbm %s3839_s7, 2048 }
  0x16   :  { %s50_s19 = sshll.u32 %s3193_s18, 4  ;;  %p3165_p8 = scmp.ne.s32.totalorder %s3839_s7, %s3164_s22  ;;  %s51_s19 = int_to_ptr.vmem [resolvable:$true] %s50_s19 }
  0x17   :  { %p3168_p9 = scmp.lt.u32.totalorder %s3164_s22, %s3839_s7 }
  0x19   :  { %p3170_p10 = pnand %p3168_p9, %p3165_p8 }
  0x1b   :  { %3173 = shalt.err (!%p3170_p10)
}
  0x1c   :  { %s3174_s28 = scalar_lea.vmem %s51_s19, 2048  ;;  %p3179_p12 = scmp.lt.s32.totalorder %s51_s19, %s51_s19 }
  0x1d   :  { %p3175_p11 = scmp.ne.s32.totalorder %s51_s19, %s3174_s28  ;;  %p3180_p13 = scmp.lt.s32.totalorder %s3174_s28, %s3174_s28 }
  0x1f   :  { %p3181_p0 = por %p3180_p13, %p3179_p12 }
  0x21   :  { %p3182_p1 = pnand %p3181_p0, %p3175_p11 }
  0x23   :  { %3185 = shalt.err (!%p3182_p1)
}
  0x24   :  { %s3194_s4 = smov 128   ;;  %s3195_s24 = smov 8  }
  0x25   :  { %56 = dma.hbm_to_vmem [thread:$0]  %s3839_s7, 2048, %s51_s19, [#allocation7], %s3194_s4, %s3194_s4, %s3195_s24  }
  0x26   :  { %3186 = dma.done.wait [#allocation5], 6144  }
  0x27   :  { %3187 = vsyncadd [#allocation5], 4294961152 }
  0x28   :  { %3188 = dma.done.wait [#allocation7], 2048  }
  0x29   :  { %3189 = vsyncadd [#allocation7], 4294965248  ;;  %v3196_v1 = vmov 0.0   ;;  %v3197_v2 = vmov 0   ;;  %v79_v3 = vld [vmem:[%s3835_s3] sm:$0xff]  ;;  %vm126_vm0 = vcmask 1043456  }
  0x2a   :  { %197 = vmatprep.mubr.f32.mxu0 %v3196_v1  ;;  %3059 = vset.pattern.permute.xlu0 %v3197_v2  ;;  %v71_v4 = vld [vmem:[%s3832_s0] sm:$0xff]  ;;  %vm101_vm1 = vcmask 31744   ;;  %v376_v5 = vld [vmem:[#allocation4 + $0x8] sm:$0xff]  ;;  %v100_v6 = vcombine.high %v79_v3, %v79_v3  ;;  %v385_v13 = vld [vmem:[#allocation4 + $0x50] sm:$0xff]  ;;  %v3198_v36 = vmov 0.0|0.0   ;;  %vm3199_vm3 = vmmov 0  }
  0x2b   :  { %3060 = vset.pattern.permute.xlu1 %v3197_v2  ;;  %v379_v7 = vld [vmem:[#allocation4 + $0x20] sm:$0xff]  ;;  %v378_v9 = vld [vmem:[#allocation4 + $0x18] sm:$0xff]  ;;  %2213 = vmatprep.mubr.msk.f32.mxu1 %vm101_vm1, %v71_v4  ;;  %v381_v15 = vld [vmem:[#allocation4 + $0x30] sm:$0xff] }
  0x2c   :  { %v375_v8 = vld [vmem:[#allocation4] sm:$0xff]  ;;  %v3302_v10 = vpack.c.bf16 %v379_v7, %v376_v5  ;;  %v382_v12 = vld [vmem:[#allocation4 + $0x38] sm:$0xff]  ;;  %2006 = vmatprep.subr.msk.mxu0 %vm126_vm0, %v100_v6  ;;  %v384_v16 = vld [vmem:[#allocation4 + $0x48] sm:$0xff] }
  0x2d   :  { %v3304_v11 = vpack.c.bf16 %v378_v9, %v375_v8  ;;  %v3307_v14 = vpack.c.bf16 %v385_v13, %v382_v12  ;;  %2007 = vmatpush1.msk.msra.mxu0 %vm126_vm0, %v79_v3  ;;  %v388_v17 = vld [vmem:[#allocation4 + $0x68] sm:$0xff]  ;;  %v391_v18 = vld [vmem:[#allocation4 + $0x80] sm:$0xff]  ;;  %v3317_v20 = vpack.c.bf16 %v384_v16, %v381_v15  ;;  %v390_v23 = vld [vmem:[#allocation4 + $0x78] sm:$0xff] }
  0x2e   :  { %2008 = vmatmul.mubr.msk.f32.vlgmr.msra.gmra.mrb[0].mxu0 %vm101_vm1, %v71_v4  ;;  %2546 = vmatprep.subr.bf16.mxu0 %v3302_v10  ;;  %v72_v19 = vld [vmem:[%s3832_s0 + $0x8] sm:$0xff]  ;;  %v3320_v21 = vpack.c.bf16 %v391_v18, %v388_v17  ;;  %v394_v24 = vld [vmem:[#allocation4 + $0x98] sm:$0xff]  ;;  %v397_v25 = vld [vmem:[#allocation4 + $0xb0] sm:$0xff] }
  0x2f   :  { %2548 = vmatpush1.bf16.msra.mxu0 %v3304_v11  ;;  %203 = vmatprep.mubr.f32.mxu0 %v3196_v1  ;;  %v387_v22 = vld [vmem:[#allocation4 + $0x60] sm:$0xff]  ;;  %v73_v26 = vld [vmem:[%s3832_s0 + $0x10] sm:$0xff]  ;;  %v3334_v29 = vpack.c.bf16 %v397_v25, %v394_v24  ;;  %v74_v38 = vld [vmem:[%s3832_s0 + $0x18] sm:$0xff] }
  0x30   :  { %2550 = vmatprep.subr.bf16.mxu0 %v3307_v14  ;;  %v3328_v27 = vpack.c.bf16 %v390_v23, %v387_v22  ;;  %v80_v28 = vld [vmem:[%s3835_s3 + $0x8] sm:$0xf]  ;;  %v393_v30 = vld [vmem:[#allocation4 + $0x90] sm:$0xff]  ;;  %v402_v43 = vld [vmem:[#allocation4 + $0xd8] sm:$0xff] }
  0x31   :  { %v396_v31 = vld [vmem:[#allocation4 + $0xa8] sm:$0xff]  ;;  %2211 = vmatprep.subr.msk.mxu1 %vm126_vm0, %v80_v28  ;;  %v403_v33 = vld [vmem:[#allocation4 + $0xe0] sm:$0xff]  ;;  %v377_v34 = vld [vmem:[#allocation4 + $0x10] sm:$0xff] }
  0x32   :  { %2009 = vmatmul.mubr.msk.f32.gmra.mrb[2].mxu0 %vm101_vm1, %v72_v19  ;;  %v400_v32 = vld [vmem:[#allocation4 + $0xc8] sm:$0xff]  ;;  %2212 = vmatpush3.msk.msra.mxu1 %vm126_vm0, %v80_v28  ;;  %v3347_v39 = vpack.c.bf16 %v396_v31, %v393_v30  ;;  %v383_v40 = vld [vmem:[#allocation4 + $0x40] sm:$0xff]  ;;  %v386_v44 = vld [vmem:[#allocation4 + $0x58] sm:$0xff] }
  0x33   :  { %2552 = vmatpush1.bf16.msra.mxu0 %v3317_v20  ;;  %209 = vmatprep.mubr.f32.mxu0 %v3196_v1  ;;  %v380_v35 = vld [vmem:[#allocation4 + $0x28] sm:$0xff]  ;;  %v3350_v41 = vpack.c.bf16 %v403_v33, %v400_v32  ;;  %v399_v42 = vld [vmem:[#allocation4 + $0xc0] sm:$0xff]  ;;  %v406_v45 = vld [vmem:[#allocation4 + $0xf8] sm:$0xff]  ;;  %v3354_v47 = vpack.c.bf16 %v386_v44, %v383_v40 }
  0x34   :  { %2554 = vmatprep.subr.bf16.mxu0 %v3320_v21  ;;  %2577 = vmatprep.subr.bf16.mxu1 %v3198_v36  ;;  %v3340_v37 = vpack.c.bf16 %v380_v35, %v377_v34  ;;  %v409_v46 = vld [vmem:[#allocation4 + $0x110] sm:$0xff]  ;;  %v392_v49 = vld [vmem:[#allocation4 + $0x88] sm:$0xff]  ;;  %v75_v50 = vld [vmem:[%s3832_s0 + $0x20] sm:$0xff]  ;;  %v3364_v51 = vpack.c.bf16 %v402_v43, %v399_v42  ;;  %v83_v35 = vlaneseq }
  0x35   :  { %2214 = vmatmul.mubr.msk.f32.vlgmr.msra.gmra.mrb[0].mxu1 %vm101_vm1, %v72_v19  ;;  %v389_v48 = vld [vmem:[#allocation4 + $0x70] sm:$0xff]  ;;  %v3367_v52 = vpack.c.bf16 %v409_v46, %v406_v45  ;;  %v408_v54 = vld [vmem:[#allocation4 + $0x108] sm:$0xff]  ;;  %v415_v56 = vld [vmem:[#allocation4 + $0x140] sm:$0xff] }
  0x36   :  { %2010 = vmatmul.mubr.msk.f32.gmra.mrb[4].mxu0 %vm101_vm1, %v73_v26  ;;  %2579 = vmatpush3.bf16.msra.mxu1 %v3340_v37  ;;  %v405_v53 = vld [vmem:[#allocation4 + $0xf0] sm:$0xff]  ;;  %v412_v55 = vld [vmem:[#allocation4 + $0x128] sm:$0xff]  ;;  %v3371_v57 = vpack.c.bf16 %v392_v49, %v389_v48  ;;  %v395_v58 = vld [vmem:[#allocation4 + $0xa0] sm:$0xff] }
  0x37   :  { %2556 = vmatpush1.bf16.msra.mxu0 %v3328_v27  ;;  %215 = vmatprep.mubr.f32.mxu0 %v3196_v1  ;;  %v398_v59 = vld [vmem:[#allocation4 + $0xb8] sm:$0xff]  ;;  %v76_v60 = vld [vmem:[%s3832_s0 + $0x28] sm:$0xff]  ;;  %v3381_v61 = vpack.c.bf16 %v408_v54, %v405_v53  ;;  %v77_v63 = vld [vmem:[%s3832_s0 + $0x30] sm:$0xff]  ;;  %v3392_v0 = vpack.c.bf16 %v415_v56, %v412_v55 }
  0x38   :  { %2558 = vmatprep.subr.bf16.mxu0 %v3334_v29  ;;  %2216 = vmatprep.mubr.msk.f32.mxu1 %vm101_vm1, %v73_v26  ;;  %v3386_v62 = vld [vmem:[%s3834_s2] sm:$0xff]  ;;  %v421_v6 = vld [vmem:[#allocation4 + $0x170] sm:$0xff]  ;;  %v3396_v7 = vpack.c.bf16 %v398_v59, %v395_v58  ;;  %v404_v9 = vld [vmem:[#allocation4 + $0xe8] sm:$0xff] }
  0x39   :  { %2580 = vmatprep.subr.bf16.mxu1 %v3198_v36  ;;  %2217 = vmatmul.mubr.msk.f32.gmra.mrb[2].mxu1 %vm101_vm1, %v74_v38  ;;  %v411_v3 = vld [vmem:[#allocation4 + $0x120] sm:$0xff]  ;;  %v414_v4 = vld [vmem:[#allocation4 + $0x138] sm:$0xff]  ;;  %v401_v8 = vld [vmem:[#allocation4 + $0xd0] sm:$0xff]  ;;  %vm596_vm2 = vcmp.eq.s32.totalorder %v3386_v62, 0  ;;  %vm768_vm4 = vcmp.eq.s32.totalorder %v3386_v62, 1  ;;  %vm940_vm5 = vcmp.eq.s32.totalorder %v3386_v62, 2 }
  0x3a   :  { %2011 = vmatmul.mubr.msk.f32.gmra.mrb[6].mxu0 %vm101_vm1, %v74_v38  ;;  %2582 = vmatpush3.bf16.msra.mxu1 %v3354_v47  ;;  %v418_v5 = vld [vmem:[#allocation4 + $0x158] sm:$0xff]  ;;  %v3404_v12 = vpack.c.bf16 %v414_v4, %v411_v3  ;;  %v417_v16 = vld [vmem:[#allocation4 + $0x150] sm:$0xff]  ;;  %v420_v17 = vld [vmem:[#allocation4 + $0x168] sm:$0xff]  ;;  %v3414_v18 = vpack.c.bf16 %v404_v9, %v401_v8  ;;  %v597_v19 = vsel %vm596_vm2, 1, %v3197_v2  ;;  %v769_v34 = vsel %vm768_vm4, 1, %v3197_v2 }
  0x3b   :  { %2560 = vmatpush1.bf16.msra.mxu0 %v3347_v39  ;;  %221 = vmatprep.mubr.f32.mxu0 %v3196_v1  ;;  %v78_v13 = vld [vmem:[%s3832_s0 + $0x38] sm:$0xff]  ;;  %v3410_v15 = vpack.c.bf16 %v421_v6, %v418_v5  ;;  %v407_v22 = vld [vmem:[#allocation4 + $0x100] sm:$0xff]  ;;  %v3423_v24 = vpack.c.bf16 %v420_v17, %v417_v16  ;;  %v416_v28 = vld [vmem:[#allocation4 + $0x148] sm:$0xff]  ;;  %v84_v38 = vshrl.u32 %v83_v35, 7  ;;  %vm1112_vm6 = vcmp.eq.s32.totalorder %v3386_v62, 3 }
  0x3c   :  { %2562 = vmatprep.subr.bf16.mxu0 %v3350_v41  ;;  %2219 = vmatprep.mubr.msk.f32.mxu1 %vm101_vm1, %v75_v50  ;;  %v410_v23 = vld [vmem:[#allocation4 + $0x118] sm:$0xff]  ;;  %v413_v26 = vld [vmem:[#allocation4 + $0x130] sm:$0xff]  ;;  %v419_v31 = vld [vmem:[#allocation4 + $0x160] sm:$0xff]  ;;  %vm1284_vm7 = vcmp.eq.s32.totalorder %v3386_v62, 4  ;;  %vm1456_vm8 = vcmp.eq.s32.totalorder %v3386_v62, 5  ;;  %vm1628_vm9 = vcmp.eq.s32.totalorder %v3386_v62, 6 }
  0x3d   :  { %2583 = vmatprep.subr.bf16.mxu1 %v3198_v36  ;;  %2220 = vmatmul.mubr.msk.f32.gmra.mrb[4].mxu1 %vm101_vm1, %v76_v60  ;;  %v3427_v25 = vpack.c.bf16 %v410_v23, %v407_v22  ;;  %v3435_v30 = vpack.c.bf16 %v416_v28, %v413_v26  ;;  %v422_v32 = vld [vmem:[#allocation4 + $0x178] sm:$0xff]  ;;  %v93_v40 = vsub.s32 2, %v84_v38  ;;  %v85_v4 = vsub.s32 0, %v84_v38 }
  0x3e   :  { %2012 = vmatmul.mubr.msk.f32.gmra.mrb[8].mxu0 %vm101_vm1, %v75_v50  ;;  %2585 = vmatpush3.bf16.msra.mxu1 %v3371_v57  ;;  %v3443_v33 = vpack.c.bf16 %v422_v32, %v419_v31  ;;  %v81_v42 = vld [vmem:[%s3837_s5] sm:$0x7]  ;;  %v89_v9 = vsub.s32 1, %v84_v38  ;;  %vm1800_vm10 = vcmp.eq.s32.totalorder %v3386_v62, 7 }
  0x3f   :  { %2564 = vmatpush1.bf16.msra.mxu0 %v3364_v51  ;;  %227 = vmatprep.mubr.f32.mxu0 %v3196_v1  ;;  %v94_v43 = vrot.slane %v81_v42, %v93_v40  ;;  %v3500_v5 = vrot.slane %v81_v42, %v85_v4  ;;  %v3509_v32 = vld [vmem:[%s3838_s6] ss:$0 sm:$0xff] }
  0x40   :  { %2566 = vmatprep.subr.bf16.mxu0 %v3367_v52  ;;  %2222 = vmatprep.mubr.msk.f32.mxu1 %vm101_vm1, %v77_v63  ;;  %v3503_v17 = vrot.slane %v81_v42, %v89_v9 }
  0x41   :  { %2586 = vmatprep.subr.bf16.mxu1 %v3198_v36  ;;  %2223 = vmatmul.mubr.msk.f32.gmra.mrb[6].mxu1 %vm101_vm1, %v78_v13 }
  0x42   :  { %2013 = vmatmul.mubr.msk.f32.gmra.mrb[10].mxu0 %vm101_vm1, %v76_v60  ;;  %2588 = vmatpush3.bf16.msra.mxu1 %v3396_v7 }
  0x43   :  { %2568 = vmatpush1.bf16.msra.mxu0 %v3381_v61  ;;  %233 = vmatprep.mubr.f32.mxu0 %v3196_v1 }
  0x44   :  { %2570 = vmatprep.subr.bf16.mxu0 %v3392_v0  ;;  %2257 = vmatprep.mubr.msk.f32.mxu1 %vm3199_vm3, %v3196_v1 }
  0x45   :  { %2589 = vmatprep.subr.bf16.mxu1 %v3198_v36  ;;  %599 = vperm.xlu0 %3059, %v597_v19  }
  0x46   :  { %2014 = vmatmul.mubr.msk.f32.gmra.mrb[12].mxu0 %vm101_vm1, %v77_v63  ;;  %2591 = vmatpush3.bf16.msra.mxu1 %v3414_v18 }
  0x47   :  { %2572 = vmatpush1.bf16.msra.mxu0 %v3404_v12  ;;  %239 = vmatprep.mubr.f32.mxu0 %v3196_v1 }
  0x48   :  { %2574 = vmatprep.subr.bf16.mxu0 %v3410_v15  ;;  %2592 = vmatprep.subr.bf16.mxu1 %v3198_v36 }
  0x49   :  { %771 = vperm.xlu0 %3059, %v769_v34  }
  0x4a   :  { %2015 = vmatmul.mubr.msk.f32.gmra.mrb[14].mxu0 %vm101_vm1, %v78_v13  ;;  %2594 = vmatpush3.bf16.msra.mxu1 %v3427_v25 }
  0x4b   :  { %2576 = vmatpush1.bf16.msra.mxu0 %v3423_v24  ;;  %498 = vmatprep.mubr.f32.mxu0 %v3196_v1 }
  0x4c   :  { %2602 = vmatprep.subr.bf16.mxu0 %v3302_v10  ;;  %2595 = vmatprep.subr.bf16.mxu1 %v3198_v36 }
  0x4e   :  { %499 = vmatmul.mubr.f32.vlgmr.msra.gmra.mrb[0].mxu0 %v3196_v1  ;;  %2597 = vmatpush3.bf16.msra.mxu1 %v3435_v30 }
  0x4f   :  { %2604 = vmatpush1.bf16.msra.mxu0 %v3304_v11  ;;  %670 = vmatprep.mubr.f32.mxu0 %v3196_v1 }
  0x50   :  { %2606 = vmatprep.subr.bf16.mxu0 %v3307_v14  ;;  %2598 = vmatprep.subr.bf16.mxu1 %v3198_v36 }
  0x52   :  { %2600 = vmatpush3.bf16.msra.mxu1 %v3443_v33 }
  0x53   :  { %2608 = vmatpush1.bf16.msra.mxu0 %v3317_v20  ;;  %2633 = vmatprep.subr.bf16.mxu1 %v3198_v36 }
  0x54   :  { %2610 = vmatprep.subr.bf16.mxu0 %v3320_v21 }
  0x55   :  { %2258 = vmatmul.mubr.f32.vlgmr.msra.gmra.mrb[8].mxu1 %v3196_v1 }
  0x56   :  { %2635 = vmatpush3.bf16.msra.mxu1 %v3340_v37  ;;  %2292 = vmatprep.mubr.msk.f32.mxu1 %vm3199_vm3, %v3196_v1 }
  0x57   :  { %2612 = vmatpush1.bf16.msra.mxu0 %v3328_v27  ;;  %2636 = vmatprep.subr.bf16.mxu1 %v3198_v36 }
  0x58   :  { %2614 = vmatprep.subr.bf16.mxu0 %v3334_v29 }
  0x5a   :  { %2638 = vmatpush3.bf16.msra.mxu1 %v3354_v47 }
  0x5b   :  { %2616 = vmatpush1.bf16.msra.mxu0 %v3347_v39  ;;  %2639 = vmatprep.subr.bf16.mxu1 %v3198_v36 }
  0x5c   :  { %2618 = vmatprep.subr.bf16.mxu0 %v3350_v41 }
  0x5e   :  { %2641 = vmatpush3.bf16.msra.mxu1 %v3371_v57 }
  0x5f   :  { %2620 = vmatpush1.bf16.msra.mxu0 %v3364_v51  ;;  %2642 = vmatprep.subr.bf16.mxu1 %v3198_v36 }
  0x60   :  { %2622 = vmatprep.subr.bf16.mxu0 %v3367_v52 }
  0x62   :  { %2644 = vmatpush3.bf16.msra.mxu1 %v3396_v7 }
  0x63   :  { %2624 = vmatpush1.bf16.msra.mxu0 %v3381_v61  ;;  %2645 = vmatprep.subr.bf16.mxu1 %v3198_v36 }
  0x64   :  { %2626 = vmatprep.subr.bf16.mxu0 %v3392_v0 }
  0x66   :  { %2647 = vmatpush3.bf16.msra.mxu1 %v3414_v18 }
  0x67   :  { %2628 = vmatpush1.bf16.msra.mxu0 %v3404_v12  ;;  %2648 = vmatprep.subr.bf16.mxu1 %v3198_v36 }
  0x68   :  { %2630 = vmatprep.subr.bf16.mxu0 %v3410_v15 }
  0x6a   :  { %2650 = vmatpush3.bf16.msra.mxu1 %v3427_v25 }
  0x6b   :  { %2632 = vmatpush1.bf16.msra.mxu0 %v3423_v24  ;;  %2651 = vmatprep.subr.bf16.mxu1 %v3198_v36 }
  0x6c   :  { %2658 = vmatprep.subr.bf16.mxu0 %v3302_v10 }
  0x6e   :  { %2653 = vmatpush3.bf16.msra.mxu1 %v3435_v30 }
  0x6f   :  { %2654 = vmatprep.subr.bf16.mxu1 %v3198_v36 }
  0x72   :  { %2656 = vmatpush3.bf16.msra.mxu1 %v3443_v33 }
  0x73   :  { %2689 = vmatprep.subr.bf16.mxu1 %v3198_v36 }
 0x108   :  { %v2215_v44 = vpop.f32.mrb[0].mxu1 }
 0x109   :  { %v3486_v45 = vadd.f32 %v2215_v44, %v94_v43  ;;  %v312_v46 = vpop.f32.mrb[1].mxu1 }
 0x10a   :  { %v313_v40 = vadd.f32 %v312_v46, %v94_v43 }
 0x10c   :  { %v2218_v48 = vpop.f32.mrb[2].mxu1 }
 0x10d   :  { %v3488_v49 = vadd.f32 %v2218_v48, %v94_v43  ;;  %v322_v50 = vpop.f32.mrb[3].mxu1 }
 0x10e   :  { %v3490_v53 = vadd.f32 %v322_v50, %v94_v43 }
 0x110   :  { %v2221_v54 = vpop.f32.mrb[4].mxu1 }
 0x111   :  { %v3492_v55 = vadd.f32 %v2221_v54, %v94_v43  ;;  %v332_v56 = vpop.f32.mrb[5].mxu1 }
 0x112   :  { %v3494_v58 = vadd.f32 %v332_v56, %v94_v43 }
 0x114   :  { %v2224_v59 = vpop.f32.mrb[6].mxu1 }
 0x115   :  { %v3496_v60 = vadd.f32 %v2224_v59, %v94_v43  ;;  %v342_v63 = vpop.f32.mrb[7].mxu1 }
 0x116   :  { %v3498_v3 = vadd.f32 %v342_v63, %v94_v43  ;;  %v941_v43 = vsel %vm940_vm5, 1, %v3197_v2 }
 0x117   :  { %943 = vperm.xlu1 %3060, %v941_v43  }
 0x121   :  { %v500_v6 = vpop.f32.mrb[0].mxu0 }
 0x122   :  { %v3017_v8 = vadd.f32 %v500_v6, %v3500_v5  ;;  %v502_v13 = vpop.f32.mrb[1].mxu0 }
 0x123   :  { %v3018_v19 = vadd.f32 %v502_v13, %v3503_v17 }
 0x124   :  { %v2026_v16 = vmul.f32 -1.442695, %v3017_v8 }
 0x125   :  { %v2027_v26 = vmul.f32 -1.442695, %v3018_v19 }
 0x126   :  { %3062 = vpow2.f32 %v2026_v16 }
 0x127   :  { %3064 = vpow2.f32 %v2027_v26 }
 0x128   :  { %v571_v22 = vpop.f32.mrb[8].mxu1 }
 0x129   :  { %v2259_v23 = vpop.f32.mrb[9].mxu1  ;;  %v589_v34 = vadd.f32 %v3509_v32, %v571_v22 }
 0x130   :  { %v3063_v28 = vpop.eup %3062 }
 0x131   :  { %v579_v31 = vadd.f32 1.0, %v3063_v28  ;;  %v3065_v35 = vpop.eup %3064 }
 0x132   :  { %v586_v44 = vadd.f32 1.0, %v3065_v35 }
 0x133   :  { %3066 = vrcp.f32 %v579_v31 }
 0x13d   :  { %v3067_v38 = vpop.eup %3066 }
 0x13e   :  { %v590_v42 = vmul.f32 %v3067_v38, %v589_v34 }
 0x140   :  { %v591_v48 = vadd.f32 %v590_v42, %v313_v40 }
 0x142   :  { %3068 = vtanh.f32 %v591_v48 }
 0x143   :  { %3070 = vrcp.f32 %v586_v44 }
 0x14c   :  { %v3069_v50 = vpop.eup %3068 }
 0x14d   :  { %v593_v54 = vsub.f32 0.0, %v3069_v50  ;;  %v3071_v56 = vpop.eup %3070 }
 0x14f   :  { %v594_v59 = vmul.f32 %v3071_v56, %v593_v54 }
 0x151   :  { %v3512_v63 = vadd.f32 %v3069_v50, %v594_v59 }
 0x153   :  { %671 = vmatmul.mubr.f32.vlgmr.msra.gmra.mrb[2].mxu0 %v3512_v63  ;;  %2293 = vmatmul.mubr.f32.vlgmr.msra.gmra.mrb[10].mxu1 %v3512_v63 }
 0x154   :  { %2660 = vmatpush1.bf16.msra.mxu0 %v3304_v11  ;;  %2691 = vmatpush3.bf16.msra.mxu1 %v3340_v37 }
 0x155   :  { %2662 = vmatprep.subr.bf16.mxu0 %v3307_v14  ;;  %2692 = vmatprep.subr.bf16.mxu1 %v3198_v36 }
 0x156   :  { %842 = vmatprep.mubr.f32.mxu0 %v3196_v1  ;;  %2327 = vmatprep.mubr.msk.f32.mxu1 %vm3199_vm3, %v3196_v1 }
 0x158   :  { %2664 = vmatpush1.bf16.msra.mxu0 %v3317_v20  ;;  %2694 = vmatpush3.bf16.msra.mxu1 %v3354_v47 }
 0x159   :  { %2666 = vmatprep.subr.bf16.mxu0 %v3320_v21  ;;  %2695 = vmatprep.subr.bf16.mxu1 %v3198_v36 }
 0x15c   :  { %2668 = vmatpush1.bf16.msra.mxu0 %v3328_v27  ;;  %2697 = vmatpush3.bf16.msra.mxu1 %v3371_v57 }
 0x15d   :  { %2670 = vmatprep.subr.bf16.mxu0 %v3334_v29  ;;  %2698 = vmatprep.subr.bf16.mxu1 %v3198_v36 }
 0x160   :  { %2672 = vmatpush1.bf16.msra.mxu0 %v3347_v39  ;;  %2700 = vmatpush3.bf16.msra.mxu1 %v3396_v7 }
 0x161   :  { %2674 = vmatprep.subr.bf16.mxu0 %v3350_v41  ;;  %2701 = vmatprep.subr.bf16.mxu1 %v3198_v36 }
 0x164   :  { %2676 = vmatpush1.bf16.msra.mxu0 %v3364_v51  ;;  %2703 = vmatpush3.bf16.msra.mxu1 %v3414_v18 }
 0x165   :  { %2678 = vmatprep.subr.bf16.mxu0 %v3367_v52  ;;  %2704 = vmatprep.subr.bf16.mxu1 %v3198_v36 }
 0x168   :  { %2680 = vmatpush1.bf16.msra.mxu0 %v3381_v61  ;;  %2706 = vmatpush3.bf16.msra.mxu1 %v3427_v25 }
 0x169   :  { %2682 = vmatprep.subr.bf16.mxu0 %v3392_v0  ;;  %2707 = vmatprep.subr.bf16.mxu1 %v3198_v36 }
 0x16c   :  { %2684 = vmatpush1.bf16.msra.mxu0 %v3404_v12  ;;  %2709 = vmatpush3.bf16.msra.mxu1 %v3435_v30 }
 0x16d   :  { %2686 = vmatprep.subr.bf16.mxu0 %v3410_v15  ;;  %2710 = vmatprep.subr.bf16.mxu1 %v3198_v36 }
 0x170   :  { %2688 = vmatpush1.bf16.msra.mxu0 %v3423_v24  ;;  %2712 = vmatpush3.bf16.msra.mxu1 %v3443_v33 }
 0x171   :  { %2714 = vmatprep.subr.bf16.mxu0 %v3302_v10  ;;  %2745 = vmatprep.subr.bf16.mxu1 %v3198_v36 }
 0x226   :  { %v672_v46 = vpop.f32.mrb[2].mxu0  ;;  %v743_v4 = vpop.f32.mrb[10].mxu1 }
 0x227   :  { %v3019_v6 = vadd.f32 %v672_v46, %v3500_v5  ;;  %v674_v8 = vpop.f32.mrb[3].mxu0  ;;  %v2294_v9 = vpop.f32.mrb[11].mxu1  ;;  %v761_v28 = vadd.f32 %v3509_v32, %v743_v4 }
 0x228   :  { %v3020_v16 = vadd.f32 %v674_v8, %v3503_v17 }
 0x229   :  { %v2028_v13 = vmul.f32 -1.442695, %v3019_v6 }
 0x22a   :  { %v2029_v19 = vmul.f32 -1.442695, %v3020_v16 }
 0x22b   :  { %3072 = vpow2.f32 %v2028_v13 }
 0x22c   :  { %3074 = vpow2.f32 %v2029_v19 }
 0x235   :  { %v3073_v22 = vpop.eup %3072 }
 0x236   :  { %v751_v23 = vadd.f32 1.0, %v3073_v22  ;;  %v3075_v26 = vpop.eup %3074 }
 0x237   :  { %v758_v38 = vadd.f32 1.0, %v3075_v26 }
 0x238   :  { %3076 = vrcp.f32 %v751_v23 }
 0x242   :  { %v3077_v31 = vpop.eup %3076 }
 0x243   :  { %v762_v34 = vmul.f32 %v3077_v31, %v761_v28 }
 0x245   :  { %v763_v35 = vadd.f32 %v762_v34, %v3486_v45  ;;  %v1113_v45 = vsel %vm1112_vm6, 1, %v3197_v2 }
 0x246   :  { %1115 = vperm.xlu1 %3060, %v1113_v45  }
 0x247   :  { %3078 = vtanh.f32 %v763_v35 }
 0x248   :  { %3080 = vrcp.f32 %v758_v38 }
 0x251   :  { %v3079_v40 = vpop.eup %3078 }
 0x252   :  { %v765_v42 = vsub.f32 %v3512_v63, %v3079_v40  ;;  %v3081_v44 = vpop.eup %3080 }
 0x254   :  { %v766_v48 = vmul.f32 %v3081_v44, %v765_v42 }
 0x256   :  { %v3558_v50 = vadd.f32 %v3079_v40, %v766_v48 }
 0x258   :  { %843 = vmatmul.mubr.f32.vlgmr.msra.gmra.mrb[4].mxu0 %v3558_v50  ;;  %2328 = vmatmul.mubr.f32.vlgmr.msra.gmra.mrb[12].mxu1 %v3558_v50 }
 0x259   :  { %2716 = vmatpush1.bf16.msra.mxu0 %v3304_v11  ;;  %2747 = vmatpush3.bf16.msra.mxu1 %v3340_v37 }
 0x25a   :  { %2718 = vmatprep.subr.bf16.mxu0 %v3307_v14  ;;  %2748 = vmatprep.subr.bf16.mxu1 %v3198_v36 }
 0x25b   :  { %1014 = vmatprep.mubr.f32.mxu0 %v3196_v1  ;;  %2362 = vmatprep.mubr.msk.f32.mxu1 %vm3199_vm3, %v3196_v1 }
 0x25d   :  { %2720 = vmatpush1.bf16.msra.mxu0 %v3317_v20  ;;  %2750 = vmatpush3.bf16.msra.mxu1 %v3354_v47 }
 0x25e   :  { %2722 = vmatprep.subr.bf16.mxu0 %v3320_v21  ;;  %2751 = vmatprep.subr.bf16.mxu1 %v3198_v36 }
 0x261   :  { %2724 = vmatpush1.bf16.msra.mxu0 %v3328_v27  ;;  %2753 = vmatpush3.bf16.msra.mxu1 %v3371_v57 }
 0x262   :  { %2726 = vmatprep.subr.bf16.mxu0 %v3334_v29  ;;  %2754 = vmatprep.subr.bf16.mxu1 %v3198_v36 }
 0x265   :  { %2728 = vmatpush1.bf16.msra.mxu0 %v3347_v39  ;;  %2756 = vmatpush3.bf16.msra.mxu1 %v3396_v7 }
 0x266   :  { %2730 = vmatprep.subr.bf16.mxu0 %v3350_v41  ;;  %2757 = vmatprep.subr.bf16.mxu1 %v3198_v36 }
 0x269   :  { %2732 = vmatpush1.bf16.msra.mxu0 %v3364_v51  ;;  %2759 = vmatpush3.bf16.msra.mxu1 %v3414_v18 }
 0x26a   :  { %2734 = vmatprep.subr.bf16.mxu0 %v3367_v52  ;;  %2760 = vmatprep.subr.bf16.mxu1 %v3198_v36 }
 0x26d   :  { %2736 = vmatpush1.bf16.msra.mxu0 %v3381_v61  ;;  %2762 = vmatpush3.bf16.msra.mxu1 %v3427_v25 }
 0x26e   :  { %2738 = vmatprep.subr.bf16.mxu0 %v3392_v0  ;;  %2763 = vmatprep.subr.bf16.mxu1 %v3198_v36 }
 0x271   :  { %2740 = vmatpush1.bf16.msra.mxu0 %v3404_v12  ;;  %2765 = vmatpush3.bf16.msra.mxu1 %v3435_v30 }
 0x272   :  { %2742 = vmatprep.subr.bf16.mxu0 %v3410_v15  ;;  %2766 = vmatprep.subr.bf16.mxu1 %v3198_v36 }
 0x275   :  { %2744 = vmatpush1.bf16.msra.mxu0 %v3423_v24  ;;  %2768 = vmatpush3.bf16.msra.mxu1 %v3443_v33 }
 0x276   :  { %2770 = vmatprep.subr.bf16.mxu0 %v3302_v10  ;;  %2801 = vmatprep.subr.bf16.mxu1 %v3198_v36 }
 0x32b   :  { %v844_v54 = vpop.f32.mrb[4].mxu0  ;;  %v915_v56 = vpop.f32.mrb[12].mxu1 }
 0x32c   :  { %v3021_v59 = vadd.f32 %v844_v54, %v3500_v5  ;;  %v846_v43 = vpop.f32.mrb[5].mxu0  ;;  %v2329_v46 = vpop.f32.mrb[13].mxu1  ;;  %v933_v19 = vadd.f32 %v3509_v32, %v915_v56 }
 0x32d   :  { %v3022_v6 = vadd.f32 %v846_v43, %v3503_v17 }
 0x32e   :  { %v2030_v4 = vmul.f32 -1.442695, %v3021_v59 }
 0x32f   :  { %v2031_v8 = vmul.f32 -1.442695, %v3022_v6 }
 0x330   :  { %3082 = vpow2.f32 %v2030_v4 }
 0x331   :  { %3084 = vpow2.f32 %v2031_v8 }
 0x33a   :  { %v3083_v9 = vpop.eup %3082 }
 0x33b   :  { %v923_v13 = vadd.f32 1.0, %v3083_v9  ;;  %v3085_v16 = vpop.eup %3084 }
 0x33c   :  { %v930_v28 = vadd.f32 1.0, %v3085_v16 }
 0x33d   :  { %3086 = vrcp.f32 %v923_v13 }
 0x347   :  { %v3087_v22 = vpop.eup %3086 }
 0x348   :  { %v934_v23 = vmul.f32 %v3087_v22, %v933_v19 }
 0x34a   :  { %v935_v26 = vadd.f32 %v934_v23, %v3490_v53  ;;  %v1285_v53 = vsel %vm1284_vm7, 1, %v3197_v2 }
 0x34b   :  { %1287 = vperm.xlu0 %3059, %v1285_v53  }
 0x34c   :  { %3088 = vtanh.f32 %v935_v26 }
 0x34d   :  { %3090 = vrcp.f32 %v930_v28 }
 0x356   :  { %v3089_v31 = vpop.eup %3088 }
 0x357   :  { %v937_v34 = vsub.f32 %v3558_v50, %v3089_v31  ;;  %v3091_v35 = vpop.eup %3090 }
 0x359   :  { %v938_v38 = vmul.f32 %v3091_v35, %v937_v34 }
 0x35b   :  { %v3604_v40 = vadd.f32 %v3089_v31, %v938_v38 }
 0x35d   :  { %1015 = vmatmul.mubr.f32.vlgmr.msra.gmra.mrb[6].mxu0 %v3604_v40  ;;  %2363 = vmatmul.mubr.f32.vlgmr.msra.gmra.mrb[14].mxu1 %v3604_v40 }
 0x35e   :  { %2772 = vmatpush1.bf16.msra.mxu0 %v3304_v11  ;;  %2803 = vmatpush3.bf16.msra.mxu1 %v3340_v37 }
 0x35f   :  { %2774 = vmatprep.subr.bf16.mxu0 %v3307_v14  ;;  %2804 = vmatprep.subr.bf16.mxu1 %v3198_v36 }
 0x360   :  { %1186 = vmatprep.mubr.f32.mxu0 %v3196_v1  ;;  %2397 = vmatprep.mubr.msk.f32.mxu1 %vm3199_vm3, %v3196_v1 }
 0x362   :  { %2776 = vmatpush1.bf16.msra.mxu0 %v3317_v20  ;;  %2806 = vmatpush3.bf16.msra.mxu1 %v3354_v47 }
 0x363   :  { %2778 = vmatprep.subr.bf16.mxu0 %v3320_v21  ;;  %2807 = vmatprep.subr.bf16.mxu1 %v3198_v36 }
 0x366   :  { %2780 = vmatpush1.bf16.msra.mxu0 %v3328_v27  ;;  %2809 = vmatpush3.bf16.msra.mxu1 %v3371_v57 }
 0x367   :  { %2782 = vmatprep.subr.bf16.mxu0 %v3334_v29  ;;  %2810 = vmatprep.subr.bf16.mxu1 %v3198_v36 }
 0x36a   :  { %2784 = vmatpush1.bf16.msra.mxu0 %v3347_v39  ;;  %2812 = vmatpush3.bf16.msra.mxu1 %v3396_v7 }
 0x36b   :  { %2786 = vmatprep.subr.bf16.mxu0 %v3350_v41  ;;  %2813 = vmatprep.subr.bf16.mxu1 %v3198_v36 }
 0x36e   :  { %2788 = vmatpush1.bf16.msra.mxu0 %v3364_v51  ;;  %2815 = vmatpush3.bf16.msra.mxu1 %v3414_v18 }
 0x36f   :  { %2790 = vmatprep.subr.bf16.mxu0 %v3367_v52  ;;  %2816 = vmatprep.subr.bf16.mxu1 %v3198_v36 }
 0x372   :  { %2792 = vmatpush1.bf16.msra.mxu0 %v3381_v61  ;;  %2818 = vmatpush3.bf16.msra.mxu1 %v3427_v25 }
 0x373   :  { %2794 = vmatprep.subr.bf16.mxu0 %v3392_v0  ;;  %2819 = vmatprep.subr.bf16.mxu1 %v3198_v36 }
 0x376   :  { %2796 = vmatpush1.bf16.msra.mxu0 %v3404_v12  ;;  %2821 = vmatpush3.bf16.msra.mxu1 %v3435_v30 }
 0x377   :  { %2798 = vmatprep.subr.bf16.mxu0 %v3410_v15  ;;  %2822 = vmatprep.subr.bf16.mxu1 %v3198_v36 }
 0x37a   :  { %2800 = vmatpush1.bf16.msra.mxu0 %v3423_v24  ;;  %2824 = vmatpush3.bf16.msra.mxu1 %v3443_v33 }
 0x37b   :  { %2826 = vmatprep.subr.bf16.mxu0 %v3302_v10  ;;  %2857 = vmatprep.subr.bf16.mxu1 %v3198_v36 }
 0x430   :  { %v1016_v42 = vpop.f32.mrb[6].mxu0  ;;  %v1087_v44 = vpop.f32.mrb[14].mxu1 }
 0x431   :  { %v3023_v48 = vadd.f32 %v1016_v42, %v3500_v5  ;;  %v1018_v45 = vpop.f32.mrb[7].mxu0  ;;  %v2364_v54 = vpop.f32.mrb[15].mxu1  ;;  %v1105_v8 = vadd.f32 %v3509_v32, %v1087_v44 }
 0x432   :  { %v3024_v59 = vadd.f32 %v1018_v45, %v3503_v17 }
 0x433   :  { %v2032_v56 = vmul.f32 -1.442695, %v3023_v48 }
 0x434   :  { %v2033_v43 = vmul.f32 -1.442695, %v3024_v59 }
 0x435   :  { %3092 = vpow2.f32 %v2032_v56 }
 0x436   :  { %3094 = vpow2.f32 %v2033_v43 }
 0x43f   :  { %v3093_v46 = vpop.eup %3092 }
 0x440   :  { %v1095_v4 = vadd.f32 1.0, %v3093_v46  ;;  %v3095_v6 = vpop.eup %3094 }
 0x441   :  { %v1102_v19 = vadd.f32 1.0, %v3095_v6 }
 0x442   :  { %3096 = vrcp.f32 %v1095_v4 }
 0x44c   :  { %v3097_v9 = vpop.eup %3096 }
 0x44d   :  { %v1106_v13 = vmul.f32 %v3097_v9, %v1105_v8 }
 0x44f   :  { %v1107_v16 = vadd.f32 %v1106_v13, %v3488_v49  ;;  %v1457_v49 = vsel %vm1456_vm8, 1, %v3197_v2 }
 0x450   :  { %1459 = vperm.xlu1 %3060, %v1457_v49  }
 0x451   :  { %3098 = vtanh.f32 %v1107_v16 }
 0x452   :  { %3100 = vrcp.f32 %v1102_v19 }
 0x45b   :  { %v3099_v22 = vpop.eup %3098 }
 0x45c   :  { %v1109_v23 = vsub.f32 %v3604_v40, %v3099_v22  ;;  %v3101_v26 = vpop.eup %3100 }
 0x45e   :  { %v1110_v28 = vmul.f32 %v3101_v26, %v1109_v23 }
 0x460   :  { %v3650_v31 = vadd.f32 %v3099_v22, %v1110_v28 }
 0x462   :  { %1187 = vmatmul.mubr.f32.vlgmr.msra.gmra.mrb[8].mxu0 %v3650_v31  ;;  %2398 = vmatmul.mubr.f32.vlgmr.msra.gmra.mrb[16].mxu1 %v3650_v31 }
 0x463   :  { %2828 = vmatpush1.bf16.msra.mxu0 %v3304_v11  ;;  %2859 = vmatpush3.bf16.msra.mxu1 %v3340_v37 }
 0x464   :  { %2830 = vmatprep.subr.bf16.mxu0 %v3307_v14  ;;  %2860 = vmatprep.subr.bf16.mxu1 %v3198_v36 }
 0x465   :  { %1358 = vmatprep.mubr.f32.mxu0 %v3196_v1  ;;  %2432 = vmatprep.mubr.msk.f32.mxu1 %vm3199_vm3, %v3196_v1 }
 0x467   :  { %2832 = vmatpush1.bf16.msra.mxu0 %v3317_v20  ;;  %2862 = vmatpush3.bf16.msra.mxu1 %v3354_v47 }
 0x468   :  { %2834 = vmatprep.subr.bf16.mxu0 %v3320_v21  ;;  %2863 = vmatprep.subr.bf16.mxu1 %v3198_v36 }
 0x46b   :  { %2836 = vmatpush1.bf16.msra.mxu0 %v3328_v27  ;;  %2865 = vmatpush3.bf16.msra.mxu1 %v3371_v57 }
 0x46c   :  { %2838 = vmatprep.subr.bf16.mxu0 %v3334_v29  ;;  %2866 = vmatprep.subr.bf16.mxu1 %v3198_v36 }
 0x46f   :  { %2840 = vmatpush1.bf16.msra.mxu0 %v3347_v39  ;;  %2868 = vmatpush3.bf16.msra.mxu1 %v3396_v7 }
 0x470   :  { %2842 = vmatprep.subr.bf16.mxu0 %v3350_v41  ;;  %2869 = vmatprep.subr.bf16.mxu1 %v3198_v36 }
 0x473   :  { %2844 = vmatpush1.bf16.msra.mxu0 %v3364_v51  ;;  %2871 = vmatpush3.bf16.msra.mxu1 %v3414_v18 }
 0x474   :  { %2846 = vmatprep.subr.bf16.mxu0 %v3367_v52  ;;  %2872 = vmatprep.subr.bf16.mxu1 %v3198_v36 }
 0x477   :  { %2848 = vmatpush1.bf16.msra.mxu0 %v3381_v61  ;;  %2874 = vmatpush3.bf16.msra.mxu1 %v3427_v25 }
 0x478   :  { %2850 = vmatprep.subr.bf16.mxu0 %v3392_v0  ;;  %2875 = vmatprep.subr.bf16.mxu1 %v3198_v36 }
 0x47b   :  { %2852 = vmatpush1.bf16.msra.mxu0 %v3404_v12  ;;  %2877 = vmatpush3.bf16.msra.mxu1 %v3435_v30 }
 0x47c   :  { %2854 = vmatprep.subr.bf16.mxu0 %v3410_v15  ;;  %2878 = vmatprep.subr.bf16.mxu1 %v3198_v36 }
 0x47f   :  { %2856 = vmatpush1.bf16.msra.mxu0 %v3423_v24  ;;  %2880 = vmatpush3.bf16.msra.mxu1 %v3443_v33 }
 0x480   :  { %2882 = vmatprep.subr.bf16.mxu0 %v3302_v10  ;;  %2913 = vmatprep.subr.bf16.mxu1 %v3198_v36 }
 0x535   :  { %v1188_v34 = vpop.f32.mrb[8].mxu0  ;;  %v1259_v35 = vpop.f32.mrb[16].mxu1 }
 0x536   :  { %v3025_v38 = vadd.f32 %v1188_v34, %v3500_v5  ;;  %v1190_v53 = vpop.f32.mrb[9].mxu0  ;;  %v2399_v42 = vpop.f32.mrb[17].mxu1  ;;  %v1277_v43 = vadd.f32 %v3509_v32, %v1259_v35 }
 0x537   :  { %v3026_v48 = vadd.f32 %v1190_v53, %v3503_v17 }
 0x538   :  { %v2034_v44 = vmul.f32 -1.442695, %v3025_v38 }
 0x539   :  { %v2035_v45 = vmul.f32 -1.442695, %v3026_v48 }
 0x53a   :  { %3102 = vpow2.f32 %v2034_v44 }
 0x53b   :  { %3104 = vpow2.f32 %v2035_v45 }
 0x544   :  { %v3103_v54 = vpop.eup %3102 }
 0x545   :  { %v1267_v56 = vadd.f32 1.0, %v3103_v54  ;;  %v3105_v59 = vpop.eup %3104 }
 0x546   :  { %v1274_v8 = vadd.f32 1.0, %v3105_v59 }
 0x547   :  { %3106 = vrcp.f32 %v1267_v56 }
 0x551   :  { %v3107_v46 = vpop.eup %3106 }
 0x552   :  { %v1278_v4 = vmul.f32 %v3107_v46, %v1277_v43 }
 0x554   :  { %v1279_v6 = vadd.f32 %v1278_v4, %v3494_v58  ;;  %v1629_v58 = vsel %vm1628_vm9, 1, %v3197_v2 }
 0x555   :  { %1631 = vperm.xlu0 %3059, %v1629_v58   ;;  %v1813_v58 = vld [vmem:[#allocation6 + $0x30] sm:$0xff] }
 0x556   :  { %3108 = vtanh.f32 %v1279_v6 }
 0x557   :  { %3110 = vrcp.f32 %v1274_v8 }
 0x560   :  { %v3109_v9 = vpop.eup %3108 }
 0x561   :  { %v1281_v13 = vsub.f32 %v3650_v31, %v3109_v9  ;;  %v3111_v16 = vpop.eup %3110 }
 0x563   :  { %v1282_v19 = vmul.f32 %v3111_v16, %v1281_v13  ;;  %v1811_v13 = vld [vmem:[#allocation6 + $0x20] sm:$0xff]  ;;  %v1812_v16 = vld [vmem:[#allocation6 + $0x28] sm:$0xff] }
 0x565   :  { %v3696_v22 = vadd.f32 %v3109_v9, %v1282_v19  ;;  %v3000_v19 = vpack.c.bf16 %v1812_v16, %v1811_v13 }
 0x567   :  { %1359 = vmatmul.mubr.f32.vlgmr.msra.gmra.mrb[10].mxu0 %v3696_v22  ;;  %2433 = vmatmul.mubr.f32.vlgmr.msra.gmra.mrb[18].mxu1 %v3696_v22 }
 0x568   :  { %2884 = vmatpush1.bf16.msra.mxu0 %v3304_v11  ;;  %2915 = vmatpush3.bf16.msra.mxu1 %v3340_v37 }
 0x569   :  { %2886 = vmatprep.subr.bf16.mxu0 %v3307_v14  ;;  %2916 = vmatprep.subr.bf16.mxu1 %v3198_v36 }
 0x56a   :  { %1530 = vmatprep.mubr.f32.mxu0 %v3196_v1  ;;  %2467 = vmatprep.mubr.msk.f32.mxu1 %vm3199_vm3, %v3196_v1 }
 0x56c   :  { %2888 = vmatpush1.bf16.msra.mxu0 %v3317_v20  ;;  %2918 = vmatpush3.bf16.msra.mxu1 %v3354_v47 }
 0x56d   :  { %2890 = vmatprep.subr.bf16.mxu0 %v3320_v21  ;;  %2919 = vmatprep.subr.bf16.mxu1 %v3198_v36 }
 0x570   :  { %2892 = vmatpush1.bf16.msra.mxu0 %v3328_v27  ;;  %2921 = vmatpush3.bf16.msra.mxu1 %v3371_v57 }
 0x571   :  { %2894 = vmatprep.subr.bf16.mxu0 %v3334_v29  ;;  %2922 = vmatprep.subr.bf16.mxu1 %v3198_v36 }
 0x574   :  { %2896 = vmatpush1.bf16.msra.mxu0 %v3347_v39  ;;  %2924 = vmatpush3.bf16.msra.mxu1 %v3396_v7 }
 0x575   :  { %2898 = vmatprep.subr.bf16.mxu0 %v3350_v41  ;;  %2925 = vmatprep.subr.bf16.mxu1 %v3198_v36 }
 0x578   :  { %2900 = vmatpush1.bf16.msra.mxu0 %v3364_v51  ;;  %2927 = vmatpush3.bf16.msra.mxu1 %v3414_v18 }
 0x579   :  { %2902 = vmatprep.subr.bf16.mxu0 %v3367_v52  ;;  %2928 = vmatprep.subr.bf16.mxu1 %v3198_v36 }
 0x57c   :  { %2904 = vmatpush1.bf16.msra.mxu0 %v3381_v61  ;;  %2930 = vmatpush3.bf16.msra.mxu1 %v3427_v25 }
 0x57d   :  { %2906 = vmatprep.subr.bf16.mxu0 %v3392_v0  ;;  %2931 = vmatprep.subr.bf16.mxu1 %v3198_v36 }
 0x580   :  { %2908 = vmatpush1.bf16.msra.mxu0 %v3404_v12  ;;  %2933 = vmatpush3.bf16.msra.mxu1 %v3435_v30 }
 0x581   :  { %2910 = vmatprep.subr.bf16.mxu0 %v3410_v15  ;;  %2934 = vmatprep.subr.bf16.mxu1 %v3198_v36 }
 0x584   :  { %2912 = vmatpush1.bf16.msra.mxu0 %v3423_v24  ;;  %2936 = vmatpush3.bf16.msra.mxu1 %v3443_v33 }
 0x585   :  { %2938 = vmatprep.subr.bf16.mxu0 %v3302_v10  ;;  %2969 = vmatprep.subr.bf16.mxu1 %v3198_v36 }
 0x63a   :  { %v1360_v23 = vpop.f32.mrb[10].mxu0  ;;  %v1431_v26 = vpop.f32.mrb[18].mxu1 }
 0x63b   :  { %v3027_v28 = vadd.f32 %v1360_v23, %v3500_v5  ;;  %v1362_v49 = vpop.f32.mrb[11].mxu0  ;;  %v2434_v34 = vpop.f32.mrb[19].mxu1  ;;  %v1449_v48 = vadd.f32 %v3509_v32, %v1431_v26  ;;  %v1815_v26 = vld [vmem:[#allocation6 + $0x40] sm:$0xff] }
 0x63c   :  { %v3028_v38 = vadd.f32 %v1362_v49, %v3503_v17  ;;  %v1817_v34 = vld [vmem:[#allocation6 + $0x50] sm:$0xff] }
 0x63d   :  { %v2036_v35 = vmul.f32 -1.442695, %v3027_v28  ;;  %v1816_v28 = vld [vmem:[#allocation6 + $0x48] sm:$0xff] }
 0x63e   :  { %v2037_v53 = vmul.f32 -1.442695, %v3028_v38  ;;  %v3006_v49 = vpack.c.bf16 %v1816_v28, %v1815_v26 }
 0x63f   :  { %3112 = vpow2.f32 %v2036_v35  ;;  %v1818_v35 = vld [vmem:[#allocation6 + $0x58] sm:$0xff] }
 0x640   :  { %3114 = vpow2.f32 %v2037_v53  ;;  %v3009_v38 = vpack.c.bf16 %v1818_v35, %v1817_v34  ;;  %v1819_v53 = vld [vmem:[#allocation6 + $0x60] sm:$0xff] }
 0x649   :  { %v3113_v42 = vpop.eup %3112 }
 0x64a   :  { %v1439_v10 = vadd.f32 1.0, %v3113_v42  ;;  %v3115_v44 = vpop.eup %3114  ;;  %v1820_v42 = vld [vmem:[#allocation6 + $0x68] sm:$0xff] }
 0x64b   :  { %v1446_v59 = vadd.f32 1.0, %v3115_v44  ;;  %v1821_v44 = vld [vmem:[#allocation6 + $0x70] sm:$0xff] }
 0x64c   :  { %3116 = vrcp.f32 %v1439_v10  ;;  %v3012_v10 = vpack.c.bf16 %v1820_v42, %v1819_v53 }
 0x656   :  { %v3117_v45 = vpop.eup %3116 }
 0x657   :  { %v1450_v54 = vmul.f32 %v3117_v45, %v1449_v48  ;;  %v1822_v48 = vld [vmem:[#allocation6 + $0x78] sm:$0xff] }
 0x658   :  { %v3015_v45 = vpack.c.bf16 %v1822_v48, %v1821_v44 }
 0x659   :  { %v1451_v56 = vadd.f32 %v1450_v54, %v3492_v55  ;;  %v1809_v55 = vld [vmem:[#allocation6 + $0x10] sm:$0xff]  ;;  %v1824_v54 = vld [vmem:[%s3840_s8] sm:$0xf] }
 0x65b   :  { %3118 = vtanh.f32 %v1451_v56  ;;  %v1823_v56 = vld [vmem:[%s3833_s1] sm:$0xff] }
 0x65c   :  { %3120 = vrcp.f32 %v1446_v59 }
 0x665   :  { %v3119_v43 = vpop.eup %3118 }
 0x666   :  { %v1453_v46 = vsub.f32 %v3696_v22, %v3119_v43  ;;  %v3121_v4 = vpop.eup %3120 }
 0x668   :  { %v1454_v6 = vmul.f32 %v3121_v4, %v1453_v46 }
 0x66a   :  { %v3742_v8 = vadd.f32 %v3119_v43, %v1454_v6 }
 0x66c   :  { %1531 = vmatmul.mubr.f32.vlgmr.msra.gmra.mrb[12].mxu0 %v3742_v8  ;;  %2468 = vmatmul.mubr.f32.vlgmr.msra.gmra.mrb[20].mxu1 %v3742_v8 }
 0x66d   :  { %2940 = vmatpush1.bf16.msra.mxu0 %v3304_v11  ;;  %2971 = vmatpush3.bf16.msra.mxu1 %v3340_v37  ;;  %v1801_v11 = vsel %vm1800_vm10, 1, %v3197_v2 }
 0x66e   :  { %2942 = vmatprep.subr.bf16.mxu0 %v3307_v14  ;;  %2972 = vmatprep.subr.bf16.mxu1 %v3198_v36 }
 0x66f   :  { %1702 = vmatprep.mubr.f32.mxu0 %v3196_v1  ;;  %2502 = vmatprep.mubr.msk.f32.mxu1 %vm3199_vm3, %v3196_v1 }
 0x670   :  { %1803 = vperm.xlu1 %3060, %v1801_v11  }
 0x671   :  { %2944 = vmatpush1.bf16.msra.mxu0 %v3317_v20  ;;  %2974 = vmatpush3.bf16.msra.mxu1 %v3354_v47 }
 0x672   :  { %2946 = vmatprep.subr.bf16.mxu0 %v3320_v21  ;;  %2975 = vmatprep.subr.bf16.mxu1 %v3198_v36 }
 0x675   :  { %2948 = vmatpush1.bf16.msra.mxu0 %v3328_v27  ;;  %2977 = vmatpush3.bf16.msra.mxu1 %v3371_v57 }
 0x676   :  { %2950 = vmatprep.subr.bf16.mxu0 %v3334_v29  ;;  %2978 = vmatprep.subr.bf16.mxu1 %v3198_v36 }
 0x679   :  { %2952 = vmatpush1.bf16.msra.mxu0 %v3347_v39  ;;  %2980 = vmatpush3.bf16.msra.mxu1 %v3396_v7 }
 0x67a   :  { %2954 = vmatprep.subr.bf16.mxu0 %v3350_v41  ;;  %2981 = vmatprep.subr.bf16.mxu1 %v3198_v36 }
 0x67d   :  { %2956 = vmatpush1.bf16.msra.mxu0 %v3364_v51  ;;  %2983 = vmatpush3.bf16.msra.mxu1 %v3414_v18 }
 0x67e   :  { %2958 = vmatprep.subr.bf16.mxu0 %v3367_v52  ;;  %2984 = vmatprep.subr.bf16.mxu1 %v3198_v36 }
 0x681   :  { %2960 = vmatpush1.bf16.msra.mxu0 %v3381_v61  ;;  %2986 = vmatpush3.bf16.msra.mxu1 %v3427_v25  ;;  %v1807_v25 = vld [vmem:[#allocation6] sm:$0xff] }
 0x682   :  { %2962 = vmatprep.subr.bf16.mxu0 %v3392_v0  ;;  %2987 = vmatprep.subr.bf16.mxu1 %v3198_v36 }
 0x685   :  { %2964 = vmatpush1.bf16.msra.mxu0 %v3404_v12  ;;  %2989 = vmatpush3.bf16.msra.mxu1 %v3435_v30  ;;  %v1808_v30 = vld [vmem:[#allocation6 + $0x8] sm:$0xff] }
 0x686   :  { %2966 = vmatprep.subr.bf16.mxu0 %v3410_v15  ;;  %2990 = vmatprep.subr.bf16.mxu1 %v3198_v36 }
 0x689   :  { %2968 = vmatpush1.bf16.msra.mxu0 %v3423_v24  ;;  %2992 = vmatpush3.bf16.msra.mxu1 %v3443_v33  ;;  %v2994_v33 = vpack.c.bf16 %v1808_v30, %v1807_v25 }
 0x68a   :  { %2993 = vmatprep.subr.bf16.mxu1 %v3198_v36  ;;  %2505 = vmatprep.subr.mxu0 %v3196_v1 }
 0x73f   :  { %v1532_v14 = vpop.f32.mrb[12].mxu0  ;;  %v1603_v20 = vpop.f32.mrb[20].mxu1 }
 0x740   :  { %v3029_v21 = vadd.f32 %v1532_v14, %v3500_v5  ;;  %v1534_v27 = vpop.f32.mrb[13].mxu0  ;;  %v2469_v29 = vpop.f32.mrb[21].mxu1  ;;  %v1621_v57 = vadd.f32 %v3509_v32, %v1603_v20 }
 0x741   :  { %v3030_v39 = vadd.f32 %v1534_v27, %v3503_v17 }
 0x742   :  { %v2038_v37 = vmul.f32 -1.442695, %v3029_v21 }
 0x743   :  { %v2039_v41 = vmul.f32 -1.442695, %v3030_v39 }
 0x744   :  { %3122 = vpow2.f32 %v2038_v37 }
 0x745   :  { %3124 = vpow2.f32 %v2039_v41  ;;  %v600_v41 = vpop.permute.xlu0 %599 }
 0x746   :  { %vm601_vm11 = vcmp.eq.s32.totalorder %v600_v41, 1 }
 0x74e   :  { %v3123_v47 = vpop.eup %3122 }
 0x74f   :  { %v1611_v51 = vadd.f32 1.0, %v3123_v47  ;;  %v3125_v52 = vpop.eup %3124 }
 0x750   :  { %v1618_v0 = vadd.f32 1.0, %v3125_v52  ;;  %v772_v52 = vpop.permute.xlu0 %771 }
 0x751   :  { %3126 = vrcp.f32 %v1611_v51  ;;  %v944_v51 = vpop.permute.xlu1 %943  ;;  %vm773_vm12 = vcmp.eq.s32.totalorder %v772_v52, 1 }
 0x752   :  { %vm945_vm13 = vcmp.eq.s32.totalorder %v944_v51, 1 }
 0x75b   :  { %v3127_v2 = vpop.eup %3126 }
 0x75c   :  { %v1622_v61 = vmul.f32 %v3127_v2, %v1621_v57  ;;  %v1116_v57 = vpop.permute.xlu1 %1115 }
 0x75d   :  { %vm1117_vm14 = vcmp.eq.s32.totalorder %v1116_v57, 1 }
 0x75e   :  { %v1623_v62 = vadd.f32 %v1622_v61, %v3498_v3  ;;  %v1810_v3 = vld [vmem:[#allocation6 + $0x18] sm:$0xff] }
 0x75f   :  { %v2997_v9 = vpack.c.bf16 %v1810_v3, %v1809_v55 }
 0x760   :  { %3128 = vtanh.f32 %v1623_v62  ;;  %v1460_v2 = vpop.permute.xlu1 %1459  ;;  %v602_v62 = vsel %vm601_vm11, %v3512_v63, 0.0 }
 0x761   :  { %3130 = vrcp.f32 %v1618_v0  ;;  %v774_v0 = vsel %vm773_vm12, %v3558_v50, %v602_v62 }
 0x76a   :  { %v3129_v7 = vpop.eup %3128 }
 0x76b   :  { %v1625_v12 = vsub.f32 %v3742_v8, %v3129_v7  ;;  %v3131_v15 = vpop.eup %3130 }
 0x76d   :  { %v1626_v18 = vmul.f32 %v3131_v15, %v1625_v12  ;;  %v946_v12 = vsel %vm945_vm13, %v3604_v40, %v774_v0  ;;  %v2044_v40 = vld [vmem:[%s3841_s9] ss:$0 sm:$0xff] }
 0x76e   :  { %v1118_v15 = vsel %vm1117_vm14, %v3650_v31, %v946_v12 }
 0x76f   :  { %v3788_v24 = vadd.f32 %v3129_v7, %v1626_v18  ;;  %v1804_v18 = vpop.permute.xlu1 %1803 }
 0x770   :  { %vm1805_vm2 = vcmp.eq.s32.totalorder %v1804_v18, 1 }
 0x771   :  { %1703 = vmatmul.mubr.f32.vlgmr.msra.gmra.mrb[14].mxu0 %v3788_v24  ;;  %2503 = vmatmul.mubr.f32.vlgmr.msra.gmra.mrb[22].mxu1 %v3788_v24 }
 0x772   :  { %2507 = vmatprep.mubr.msk.f32.mxu0 %vm3199_vm3, %v3196_v1  ;;  %2542 = vmatprep.mubr.msk.f32.mxu1 %vm3199_vm3, %v3196_v1  ;;  %v1814_v1 = vld [vmem:[#allocation6 + $0x38] sm:$0xff]  ;;  %vm1998_vm3 = vcmask 7168  }
 0x773   :  { %2995 = vmatpush3.bf16.msra.mxu1 %v2994_v33  ;;  %v3003_v23 = vpack.c.bf16 %v1814_v1, %v1813_v58  ;;  %2506 = vmatpush3.msk.msra.mxu0 %vm126_vm0, %v1824_v54  ;;  %vm1461_vm0 = vcmp.eq.s32.totalorder %v1460_v2, 1 }
 0x774   :  { %2996 = vmatprep.subr.bf16.mxu1 %v3198_v36 }
 0x775   :  { %2508 = vmatmul.mubr.msk.f32.vlgmr.msra.gmra.mrb[16].mxu0 %vm101_vm1, %v1823_v56 }
 0x777   :  { %2998 = vmatpush3.bf16.msra.mxu1 %v2997_v9 }
 0x778   :  { %2999 = vmatprep.subr.bf16.mxu1 %v3198_v36 }
 0x77b   :  { %3001 = vmatpush3.bf16.msra.mxu1 %v3000_v19 }
 0x77c   :  { %3002 = vmatprep.subr.bf16.mxu1 %v3198_v36 }
 0x77f   :  { %3004 = vmatpush3.bf16.msra.mxu1 %v3003_v23 }
 0x780   :  { %3005 = vmatprep.subr.bf16.mxu1 %v3198_v36 }
 0x783   :  { %3007 = vmatpush3.bf16.msra.mxu1 %v3006_v49 }
 0x784   :  { %3008 = vmatprep.subr.bf16.mxu1 %v3198_v36 }
 0x787   :  { %3010 = vmatpush3.bf16.msra.mxu1 %v3009_v38 }
 0x788   :  { %3011 = vmatprep.subr.bf16.mxu1 %v3198_v36 }
 0x78b   :  { %3013 = vmatpush3.bf16.msra.mxu1 %v3012_v10 }
 0x78c   :  { %3014 = vmatprep.subr.bf16.mxu1 %v3198_v36 }
 0x78f   :  { %3016 = vmatpush3.bf16.msra.mxu1 %v3015_v45 }
 0x844   :  { %v1704_v59 = vpop.f32.mrb[14].mxu0  ;;  %v1775_v43 = vpop.f32.mrb[22].mxu1 }
 0x845   :  { %v3031_v36 = vadd.f32 %v1704_v59, %v3500_v5  ;;  %v1706_v46 = vpop.f32.mrb[15].mxu0  ;;  %v2504_v4 = vpop.f32.mrb[23].mxu1  ;;  %v1793_v29 = vadd.f32 %v3509_v32, %v1775_v43 }
 0x846   :  { %v3032_v11 = vadd.f32 %v1706_v46, %v3503_v17  ;;  %v1288_v17 = vpop.permute.xlu0 %1287 }
 0x847   :  { %v2040_v6 = vmul.f32 -1.442695, %v3031_v36  ;;  %vm1289_vm15 = vcmp.eq.s32.totalorder %v1288_v17, 1 }
 0x848   :  { %v2041_v14 = vmul.f32 -1.442695, %v3032_v11  ;;  %v1290_v30 = vsel %vm1289_vm15, %v3696_v22, %v1118_v15  ;;  %v1897_v3 = vpop.f32.mrb[16].mxu0  ;;  %v2045_v22 = vld [vmem:[%s3842_s10] ss:$0 sm:$0xff] }
 0x849   :  { %3132 = vpow2.f32 %v2040_v6  ;;  %v1462_v63 = vsel %vm1461_vm0, %v3742_v8, %v1290_v30  ;;  %v2509_v9 = vpop.f32.mrb[17].mxu0 }
 0x84a   :  { %3134 = vpow2.f32 %v2041_v14  ;;  %v1632_v32 = vpop.permute.xlu0 %1631 }
 0x84b   :  { %vm1633_vm1 = vcmp.eq.s32.totalorder %v1632_v32, 1 }
 0x84c   :  { %v1634_v55 = vsel %vm1633_vm1, %v3788_v24, %v1462_v63 }
 0x853   :  { %v3133_v20 = vpop.eup %3132 }
 0x854   :  { %v1783_v21 = vadd.f32 1.0, %v3133_v20  ;;  %v3135_v27 = vpop.eup %3134 }
 0x855   :  { %v1790_v5 = vadd.f32 1.0, %v3135_v27 }
 0x856   :  { %3136 = vrcp.f32 %v1783_v21 }
 0x860   :  { %v3137_v37 = vpop.eup %3136 }
 0x861   :  { %v1794_v39 = vmul.f32 %v3137_v37, %v1793_v29 }
 0x863   :  { %v1795_v47 = vadd.f32 %v1794_v39, %v3496_v60 }
 0x865   :  { %3138 = vtanh.f32 %v1795_v47 }
 0x866   :  { %3140 = vrcp.f32 %v1790_v5 }
 0x86f   :  { %v3139_v61 = vpop.eup %3138 }
 0x870   :  { %v1797_v60 = vsub.f32 %v3788_v24, %v3139_v61  ;;  %v3141_v7 = vpop.eup %3140  ;;  %v2046_v24 = vld [vmem:[#allocation3] ss:$0 sm:$0xff] }
 0x872   :  { %v1798_v25 = vmul.f32 %v3141_v7, %v1797_v60 }
 0x874   :  { %v1799_v33 = vadd.f32 %v3139_v61, %v1798_v25 }
 0x876   :  { %v1806_v50 = vsel %vm1805_vm2, %v1799_v33, %v1634_v55 }
 0x877   :  { %2543 = vmatmul.mubr.f32.vlgmr.msra.gmra.mrb[24].mxu1 %v1806_v50 }
 0x94a   :  { %v1967_v13 = vpop.f32.mrb[24].mxu1 }
 0x94b   :  { %v1968_v31 = vadd.f32 %v1967_v13, %v1897_v3  ;;  %v2544_v16 = vpop.f32.mrb[25].mxu1 }
 0x94d   :  { %v1978_v19 = vadd.f32 %v2044_v40, %v1968_v31 }
 0x94f   :  { %v1979_v8 = vmax.f32 %v1978_v19, 0.0 }
 0x951   :  { %v1987_v58 = vmul.f32 %v2045_v22, %v1979_v8 }
 0x953   :  { %1988 = vadd.xlane.f32.xlu0 %v1987_v58 }
 0x9e0   :  { %v1989_v1 = vpop.xlane.xlu0 %1988 }
 0x9e1   :  { %v1997_v23 = vadd.f32 %v2046_v24, %v1989_v1 }
 0x9e3   :  { %1999 = vst.msk [vmem:[%s3844_s12] sm:$0xff] %vm1998_vm3, %v1997_v23 }
 0x9e4   :  { %2004 = vsyncpa [#allocation5], 1 }
 0x9e5   :  { %2005 = vsyncpa [#allocation7], 1 }

</bundles_post_ra>
